<compile_context>
chip_gen: v7x
topology: tpu7x:2x2x1
jax: 0.10.0
libtpu: 0.0.40
codegen_flags: <defaults>
</compile_context>

<pallas_src>
import functools
import math

import jax
import jax.numpy as jnp
from jax.experimental import pallas as pl
from jax.experimental.pallas import tpu as pltpu

# ---- scaled-down PhoBERT(RoBERTa)-base config, synthetic weights -----------
VOCAB = 64
HIDDEN = 128
N_HEADS = 2
HEAD_DIM = HIDDEN // N_HEADS
FFN = 256
N_LAYERS = 2
MAX_POS = 40
NUM_CLASSES = 4          # stands in for train_config.NUM_CLASSES
PAD_CLASSES = 128        # lane-dense classifier output width (sliced outside)
LN_EPS = 1e-5
PAD_TOKEN = 1            # RoBERTa padding_idx

_VMEM = pltpu.MemorySpace.VMEM


# ----------------------------- in-kernel helpers -----------------------------
def _ln(x, g, b):
    # f32 LayerNorm over the last (lane) axis.
    mu = jnp.mean(x, axis=-1, keepdims=True)
    var = jnp.mean(jnp.square(x - mu), axis=-1, keepdims=True)
    return (x - mu) * jax.lax.rsqrt(var + LN_EPS) * g + b


# ----------------------------- Pallas kernels --------------------------------
def _ln_kernel(x_ref, g_ref, b_ref, o_ref):
    x = x_ref[...].astype(jnp.float32)
    o_ref[...] = _ln(x, g_ref[...], b_ref[...]).astype(o_ref.dtype)


def layernorm(x, g, b):
    # x: (M, H), g/b: (1, H). Single VMEM block, grid-less.
    return pl.pallas_call(
        _ln_kernel,
        out_shape=jax.ShapeDtypeStruct(x.shape, x.dtype),
        in_specs=[pl.BlockSpec(memory_space=_VMEM)] * 3,
        out_specs=pl.BlockSpec(memory_space=_VMEM),
    )(x, g, b)


def _layer_kernel(h_ref, bias_ref, wqkv_ref, bqkv_ref, wo_ref, bo_ref,
                  ln1g_ref, ln1b_ref, w1_ref, b1_ref, w2_ref, b2_ref,
                  ln2g_ref, ln2b_ref, o_ref, *, n_heads, head_dim):
    """One full RoBERTa encoder layer on a (B*S, H) token block."""
    H = n_heads * head_dim
    x = h_ref[...]                                    # (M, H) f32
    bias = bias_ref[...]                              # (M, M) f32 additive mask
    x_bf = x.astype(jnp.bfloat16)

    # --- fused QKV projection (scale already folded into Q columns) ---------
    qkv = jnp.dot(x_bf, wqkv_ref[...],
                  preferred_element_type=jnp.float32) + bqkv_ref[...]  # (M, 3H)

    # --- attention: per-head static lane slices, block-diagonal batch mask ---
    ctx_heads = []
    for hd in range(n_heads):
        lo = hd * head_dim
        q_h = qkv[:, lo:lo + head_dim].astype(jnp.bfloat16)           # (M, D)
        k_h = qkv[:, H + lo:H + lo + head_dim].astype(jnp.bfloat16)   # (M, D)
        v_h = qkv[:, 2 * H + lo:2 * H + lo + head_dim].astype(jnp.bfloat16)
        # scores = q @ k^T via dot_general (no explicit transpose), f32 accum.
        s = jax.lax.dot_general(q_h, k_h, (((1,), (1,)), ((), ())),
                                preferred_element_type=jnp.float32)   # (M, M)
        s = s + bias
        s = s - jnp.max(s, axis=-1, keepdims=True)
        p = jnp.exp(s)
        denom = jnp.sum(p, axis=-1, keepdims=True)
        p = p * pl.reciprocal(denom, approx=True)
        ctx_heads.append(jnp.dot(p.astype(jnp.bfloat16), v_h,
                                 preferred_element_type=jnp.float32))  # (M, D)
    ctx = jnp.concatenate(ctx_heads, axis=-1)                          # (M, H)

    # --- output projection + residual + LayerNorm (post-LN, RoBERTa) --------
    attn_out = jnp.dot(ctx.astype(jnp.bfloat16), wo_ref[...],
                       preferred_element_type=jnp.float32) + bo_ref[...]
    h1 = _ln(x + attn_out, ln1g_ref[...], ln1b_ref[...])

    # --- FFN (tanh-approx GELU on the EUP) + residual + LayerNorm -----------
    ff = jnp.dot(h1.astype(jnp.bfloat16), w1_ref[...],
                 preferred_element_type=jnp.float32) + b1_ref[...]
    ff = jax.nn.gelu(ff, approximate=True)
    ff = jnp.dot(ff.astype(jnp.bfloat16), w2_ref[...],
                 preferred_element_type=jnp.float32) + b2_ref[...]
    h2 = _ln(h1 + ff, ln2g_ref[...], ln2b_ref[...])

    o_ref[...] = h2.astype(o_ref.dtype)


def encoder_layer(p, h, attn_bias):
    # h: (B*S, H) f32; attn_bias: (B*S, B*S) f32 additive mask.
    M = h.shape[0]
    return pl.pallas_call(
        functools.partial(_layer_kernel, n_heads=N_HEADS, head_dim=HEAD_DIM),
        out_shape=jax.ShapeDtypeStruct((M, HIDDEN), jnp.float32),
        in_specs=[pl.BlockSpec(memory_space=_VMEM)] * 14,
        out_specs=pl.BlockSpec(memory_space=_VMEM),
    )(h, attn_bias, p["wqkv"], p["bqkv"], p["wo"], p["bo"],
      p["ln1_g"], p["ln1_b"], p["w1"], p["b1"], p["w2"], p["b2"],
      p["ln2_g"], p["ln2_b"])


def _classifier_kernel(x_ref, w1_ref, b1_ref, w2_ref, b2_ref, o_ref):
    # Linear(H,H) -> (Dropout: identity at inference) -> Linear(H, PAD_CLASSES)
    x = x_ref[...].astype(jnp.bfloat16)
    z = jnp.dot(x, w1_ref[...], preferred_element_type=jnp.float32) + b1_ref[...]
    logits = jnp.dot(z.astype(jnp.bfloat16), w2_ref[...],
                     preferred_element_type=jnp.float32) + b2_ref[...]
    o_ref[...] = logits.astype(o_ref.dtype)


def classifier(x, w1, b1, w2, b2):
    B = x.shape[0]
    return pl.pallas_call(
        _classifier_kernel,
        out_shape=jax.ShapeDtypeStruct((B, PAD_CLASSES), jnp.float32),
        in_specs=[pl.BlockSpec(memory_space=_VMEM)] * 5,
        out_specs=pl.BlockSpec(memory_space=_VMEM),
    )(x, w1, b1, w2, b2)


# ----------------------------- model (glue + kernels) ------------------------
def phobert_feedforward(params, input_ids, attn_mask):
    """Equivalent of PhoBertFeedForward_base.forward (inference)."""
    B, S = input_ids.shape

    # Embeddings (gathers are plain-JAX glue); RoBERTa positions offset by pad.
    pos_ids = jnp.cumsum(attn_mask, axis=1) * attn_mask + PAD_TOKEN
    h = (params["word_emb"][input_ids]
         + params["pos_emb"][pos_ids]
         + params["type_emb"][0])
    h = layernorm(h.reshape(B * S, HIDDEN),
                  params["emb_ln_g"], params["emb_ln_b"])      # (B*S, H)

    # Additive attention bias over flattened tokens:
    #   -1e9 for padded keys and for cross-batch (block-diagonal) pairs.
    batch_idx = jnp.repeat(jnp.arange(B), S)                   # (B*S,)
    key_valid = attn_mask.reshape(B * S) > 0
    allowed = (batch_idx[:, None] == batch_idx[None, :]) & key_valid[None, :]
    attn_bias = jnp.where(allowed, 0.0, -1e9).astype(jnp.float32)

    for layer in params["layers"]:
        h = encoder_layer(layer, h, attn_bias)

    last_hidden_cls = h.reshape(B, S, HIDDEN)[:, 0, :]          # bert_feature[0][:, 0, :]

    # classifier: Linear -> Dropout -> Linear (Dropout identity at inference).
    logits_padded = classifier(last_hidden_cls,
                               params["cls_w1"], params["cls_b1"],
                               params["cls_w2p"], params["cls_b2p"])
    return logits_padded[:, :NUM_CLASSES]


# ----------------------------- deterministic init ----------------------------
def init_params(key):
    # TODO(synk): PyTorch loads vinai/phobert-base pretrained weights; here we
    # initialize deterministically (normal*0.02) since no checkpoint loading.
    keys = jax.random.split(key, 8)
    scale = 1.0 / math.sqrt(HEAD_DIM)

    def dense(k, fi, fo):
        return (jax.random.normal(k, (fi, fo), jnp.float32) * 0.02,
                jnp.zeros((1, fo), jnp.float32))

    p = {
        "word_emb": jax.random.normal(keys[0], (VOCAB, HIDDEN), jnp.float32) * 0.02,
        "pos_emb": jax.random.normal(keys[1], (MAX_POS, HIDDEN), jnp.float32) * 0.02,
        "type_emb": jax.random.normal(keys[2], (1, HIDDEN), jnp.float32) * 0.02,
        "emb_ln_g": jnp.ones((1, HIDDEN), jnp.float32),
        "emb_ln_b": jnp.zeros((1, HIDDEN), jnp.float32),
    }
    layers = []
    for lk in jax.random.split(keys[3], N_LAYERS):
        ks = jax.random.split(lk, 6)
        wq, bq = dense(ks[0], HIDDEN, HIDDEN)
        wk, bk = dense(ks[1], HIDDEN, HIDDEN)
        wv, bv = dense(ks[2], HIDDEN, HIDDEN)
        wo, bo = dense(ks[3], HIDDEN, HIDDEN)
        w1, b1 = dense(ks[4], HIDDEN, FFN)
        w2, b2 = dense(ks[5], FFN, HIDDEN)
        layers.append({
            # fused QKV weight; 1/sqrt(head_dim) folded into the Q columns.
            "wqkv": jnp.concatenate([wq * scale, wk, wv], axis=1).astype(jnp.bfloat16),
            "bqkv": jnp.concatenate([bq * scale, bk, bv], axis=1),
            "wo": wo.astype(jnp.bfloat16), "bo": bo,
            "ln1_g": jnp.ones((1, HIDDEN), jnp.float32),
            "ln1_b": jnp.zeros((1, HIDDEN), jnp.float32),
            "w1": w1.astype(jnp.bfloat16), "b1": b1,
            "w2": w2.astype(jnp.bfloat16), "b2": b2,
            "ln2_g": jnp.ones((1, HIDDEN), jnp.float32),
            "ln2_b": jnp.zeros((1, HIDDEN), jnp.float32),
        })
    p["layers"] = layers

    cw1, cb1 = dense(keys[4], HIDDEN, HIDDEN)
    cw2, cb2 = dense(keys[5], HIDDEN, NUM_CLASSES)
    p["cls_w1"] = cw1.astype(jnp.bfloat16)
    p["cls_b1"] = cb1
    # pad the final projection to 128 lanes (unused columns are exactly zero)
    p["cls_w2p"] = (jnp.zeros((HIDDEN, PAD_CLASSES), jnp.float32)
                    .at[:, :NUM_CLASSES].set(cw2).astype(jnp.bfloat16))
    p["cls_b2p"] = (jnp.zeros((1, PAD_CLASSES), jnp.float32)
                    .at[:, :NUM_CLASSES].set(cb2))
    return p


if __name__ == "__main__":
    key = jax.random.PRNGKey(0)
    pkey, ikey = jax.random.split(key)
    params = init_params(pkey)

    B, S = 2, 16
    input_ids = jax.random.randint(ikey, (B, S), 2, VOCAB, dtype=jnp.int32)
    input_ids = input_ids.at[:, 0].set(0)                      # <s> (CLS) token
    lengths = jnp.array([S, 12])
    attn_mask = (jnp.arange(S)[None, :] < lengths[:, None]).astype(jnp.int32)
    input_ids = jnp.where(attn_mask == 1, input_ids, PAD_TOKEN)

    logits = jax.jit(phobert_feedforward)(params, input_ids, attn_mask)
    jax.block_until_ready(logits)
    assert logits.shape == (B, NUM_CLASSES)
    assert bool(jnp.all(jnp.isfinite(logits)))
    print("KERNEL_OK")
</pallas_src>

<mosaic_0001>
module attributes {stable_mosaic.version = 11 : i64} {
  func.func @_ln_kernel(%arg0: memref<32x128xf32, #tpu.memory_space<vmem>>, %arg1: memref<1x128xf32, #tpu.memory_space<vmem>>, %arg2: memref<1x128xf32, #tpu.memory_space<vmem>>, %arg3: memref<32x128xf32, #tpu.memory_space<vmem>>) attributes {dimension_semantics = [], scalar_prefetch = 0 : i64, scratch_operands = 0 : i64, tpu.core_type = #tpu.core_type<tc>} {
    %c0 = arith.constant 0 : index
    %c0_0 = arith.constant 0 : index
    %0 = vector.load %arg0[%c0, %c0_0] : memref<32x128xf32, #tpu.memory_space<vmem>>, vector<32x128xf32>
    %c0_1 = arith.constant 0 : index
    %c0_2 = arith.constant 0 : index
    %1 = vector.load %arg1[%c0_1, %c0_2] : memref<1x128xf32, #tpu.memory_space<vmem>>, vector<1x128xf32>
    %c0_3 = arith.constant 0 : index
    %c0_4 = arith.constant 0 : index
    %2 = vector.load %arg2[%c0_3, %c0_4] : memref<1x128xf32, #tpu.memory_space<vmem>>, vector<1x128xf32>
    %cst = arith.constant dense<0.000000e+00> : vector<32xf32>
    %3 = vector.multi_reduction <add>, %0, %cst [1] : vector<32x128xf32> to vector<32xf32>
    %4 = vector.shape_cast %3 : vector<32xf32> to vector<32x1xf32>
    %cst_5 = arith.constant 1.280000e+02 : f32
    %5 = vector.broadcast %cst_5 : f32 to vector<32x1xf32>
    %6 = arith.divf %4, %5 : vector<32x1xf32>
    %7 = vector.broadcast %6 : vector<32x1xf32> to vector<32x128xf32>
    %8 = arith.subf %0, %7 : vector<32x128xf32>
    %9 = arith.mulf %8, %8 : vector<32x128xf32>
    %cst_6 = arith.constant dense<0.000000e+00> : vector<32xf32>
    %10 = vector.multi_reduction <add>, %9, %cst_6 [1] : vector<32x128xf32> to vector<32xf32>
    %11 = vector.shape_cast %10 : vector<32xf32> to vector<32x1xf32>
    %cst_7 = arith.constant 1.280000e+02 : f32
    %12 = vector.broadcast %cst_7 : f32 to vector<32x1xf32>
    %13 = arith.divf %11, %12 : vector<32x1xf32>
    %14 = vector.broadcast %6 : vector<32x1xf32> to vector<32x128xf32>
    %15 = arith.subf %0, %14 : vector<32x128xf32>
    %cst_8 = arith.constant 9.99999974E-6 : f32
    %16 = vector.broadcast %cst_8 : f32 to vector<32x1xf32>
    %17 = arith.addf %13, %16 : vector<32x1xf32>
    %18 = math.rsqrt %17 : vector<32x1xf32>
    %19 = vector.broadcast %18 : vector<32x1xf32> to vector<32x128xf32>
    %20 = arith.mulf %15, %19 : vector<32x128xf32>
    %21 = vector.broadcast %1 : vector<1x128xf32> to vector<32x128xf32>
    %22 = arith.mulf %20, %21 : vector<32x128xf32>
    %23 = vector.broadcast %2 : vector<1x128xf32> to vector<32x128xf32>
    %24 = arith.addf %22, %23 : vector<32x128xf32>
    %c0_9 = arith.constant 0 : index
    %c0_10 = arith.constant 0 : index
    %25 = vector.load %arg3[%c0_9, %c0_10] : memref<32x128xf32, #tpu.memory_space<vmem>>, vector<32x128xf32>
    tpu.vector_store %arg3[%c0_9, %c0_10], %24 {strides = array<i32>} : memref<32x128xf32, #tpu.memory_space<vmem>>, vector<32x128xf32>,
    return
  }
}

module attributes {stable_mosaic.version = 11 : i64} {
  func.func @_layer_kernel(%arg0: memref<32x128xf32, #tpu.memory_space<vmem>>, %arg1: memref<32x32xf32, #tpu.memory_space<vmem>>, %arg2: memref<128x384xbf16, #tpu.memory_space<vmem>>, %arg3: memref<1x384xf32, #tpu.memory_space<vmem>>, %arg4: memref<128x128xbf16, #tpu.memory_space<vmem>>, %arg5: memref<1x128xf32, #tpu.memory_space<vmem>>, %arg6: memref<1x128xf32, #tpu.memory_space<vmem>>, %arg7: memref<1x128xf32, #tpu.memory_space<vmem>>, %arg8: memref<128x256xbf16, #tpu.memory_space<vmem>>, %arg9: memref<1x256xf32, #tpu.memory_space<vmem>>, %arg10: memref<256x128xbf16, #tpu.memory_space<vmem>>, %arg11: memref<1x128xf32, #tpu.memory_space<vmem>>, %arg12: memref<1x128xf32, #tpu.memory_space<vmem>>, %arg13: memref<1x128xf32, #tpu.memory_space<vmem>>, %arg14: memref<32x128xf32, #tpu.memory_space<vmem>>) attributes {dimension_semantics = [], scalar_prefetch = 0 : i64, scratch_operands = 0 : i64, tpu.core_type = #tpu.core_type<tc>} {
    %c0 = arith.constant 0 : index
    %c0_0 = arith.constant 0 : index
    %0 = vector.load %arg0[%c0, %c0_0] : memref<32x128xf32, #tpu.memory_space<vmem>>, vector<32x128xf32>
    %c0_1 = arith.constant 0 : index
    %c0_2 = arith.constant 0 : index
    %1 = vector.load %arg1[%c0_1, %c0_2] : memref<32x32xf32, #tpu.memory_space<vmem>>, vector<32x32xf32>
    %2 = arith.truncf %0 : vector<32x128xf32> to vector<32x128xbf16>
    %c0_3 = arith.constant 0 : index
    %c0_4 = arith.constant 0 : index
    %3 = vector.load %arg2[%c0_3, %c0_4] : memref<128x384xbf16, #tpu.memory_space<vmem>>, vector<128x384xbf16>
    %cst = arith.constant dense<0.000000e+00> : vector<32x384xf32>
    %4 = tpu.matmul %2, %3, %cst {dimension_numbers = #tpu.dot_dimension_numbers<[1], [0], [0], [1], [0, 0, 1, 1], [], []>} : vector<32x128xbf16>, vector<128x384xbf16>, vector<32x384xf32> -> vector<32x384xf32>
    %c0_5 = arith.constant 0 : index
    %c0_6 = arith.constant 0 : index
    %5 = vector.load %arg3[%c0_5, %c0_6] : memref<1x384xf32, #tpu.memory_space<vmem>>, vector<1x384xf32>
    %6 = vector.broadcast %5 : vector<1x384xf32> to vector<32x384xf32>
    %7 = arith.addf %4, %6 : vector<32x384xf32>
    %8 = vector.extract_strided_slice %7 {offsets = [0, 0], sizes = [32, 64], strides = [1, 1]} : vector<32x384xf32> to vector<32x64xf32>
    %9 = arith.truncf %8 : vector<32x64xf32> to vector<32x64xbf16>
    %10 = vector.extract_strided_slice %7 {offsets = [0, 128], sizes = [32, 64], strides = [1, 1]} : vector<32x384xf32> to vector<32x64xf32>
    %11 = arith.truncf %10 : vector<32x64xf32> to vector<32x64xbf16>
    %12 = vector.extract_strided_slice %7 {offsets = [0, 256], sizes = [32, 64], strides = [1, 1]} : vector<32x384xf32> to vector<32x64xf32>
    %13 = arith.truncf %12 : vector<32x64xf32> to vector<32x64xbf16>
    %cst_7 = arith.constant dense<0.000000e+00> : vector<32x32xf32>
    %14 = tpu.matmul %9, %11, %cst_7 {dimension_numbers = #tpu.dot_dimension_numbers<[1], [1], [0], [0], [0, 0, 1, 0], [], []>} : vector<32x64xbf16>, vector<32x64xbf16>, vector<32x32xf32> -> vector<32x32xf32>
    %15 = arith.addf %14, %1 : vector<32x32xf32>
    %cst_8 = arith.constant dense<0xFF800000> : vector<32xf32>
    %16 = vector.multi_reduction <maximumf>, %15, %cst_8 [1] : vector<32x32xf32> to vector<32xf32>
    %17 = vector.shape_cast %16 : vector<32xf32> to vector<32x1xf32>
    %18 = vector.broadcast %17 : vector<32x1xf32> to vector<32x32xf32>
    %19 = arith.subf %15, %18 : vector<32x32xf32>
    %20 = math.exp %19 : vector<32x32xf32>
    %cst_9 = arith.constant dense<0.000000e+00> : vector<32xf32>
    %21 = vector.multi_reduction <add>, %20, %cst_9 [1] : vector<32x32xf32> to vector<32xf32>
    %22 = vector.shape_cast %21 : vector<32xf32> to vector<32x1xf32>
    %23 = tpu.reciprocal %22 {approx = true} : vector<32x1xf32> -> vector<32x1xf32>
    %24 = vector.broadcast %23 : vector<32x1xf32> to vector<32x32xf32>
    %25 = arith.mulf %20, %24 : vector<32x32xf32>
    %26 = arith.truncf %25 : vector<32x32xf32> to vector<32x32xbf16>
    %cst_10 = arith.constant dense<0.000000e+00> : vector<32x64xf32>
    %27 = tpu.matmul %26, %13, %cst_10 {dimension_numbers = #tpu.dot_dimension_numbers<[1], [0], [0], [1], [0, 0, 1, 1], [], []>} : vector<32x32xbf16>, vector<32x64xbf16>, vector<32x64xf32> -> vector<32x64xf32>
    %28 = vector.extract_strided_slice %7 {offsets = [0, 64], sizes = [32, 64], strides = [1, 1]} : vector<32x384xf32> to vector<32x64xf32>
    %29 = arith.truncf %28 : vector<32x64xf32> to vector<32x64xbf16>
    %30 = vector.extract_strided_slice %7 {offsets = [0, 192], sizes = [32, 64], strides = [1, 1]} : vector<32x384xf32> to vector<32x64xf32>
    %31 = arith.truncf %30 : vector<32x64xf32> to vector<32x64xbf16>
    %32 = vector.extract_strided_slice %7 {offsets = [0, 320], sizes = [32, 64], strides = [1, 1]} : vector<32x384xf32> to vector<32x64xf32>
    %33 = arith.truncf %32 : vector<32x64xf32> to vector<32x64xbf16>
    %cst_11 = arith.constant dense<0.000000e+00> : vector<32x32xf32>
    %34 = tpu.matmul %29, %31, %cst_11 {dimension_numbers = #tpu.dot_dimension_numbers<[1], [1], [0], [0], [0, 0, 1, 0], [], []>} : vector<32x64xbf16>, vector<32x64xbf16>, vector<32x32xf32> -> vector<32x32xf32>
    %35 = arith.addf %34, %1 : vector<32x32xf32>
    %cst_12 = arith.constant dense<0xFF800000> : vector<32xf32>
    %36 = vector.multi_reduction <maximumf>, %35, %cst_12 [1] : vector<32x32xf32> to vector<32xf32>
    %37 = vector.shape_cast %36 : vector<32xf32> to vector<32x1xf32>
    %38 = vector.broadcast %37 : vector<32x1xf32> to vector<32x32xf32>
    %39 = arith.subf %35, %38 : vector<32x32xf32>
    %40 = math.exp %39 : vector<32x32xf32>
    %cst_13 = arith.constant dense<0.000000e+00> : vector<32xf32>
    %41 = vector.multi_reduction <add>, %40, %cst_13 [1] : vector<32x32xf32> to vector<32xf32>
    %42 = vector.shape_cast %41 : vector<32xf32> to vector<32x1xf32>
    %43 = tpu.reciprocal %42 {approx = true} : vector<32x1xf32> -> vector<32x1xf32>
    %44 = vector.broadcast %43 : vector<32x1xf32> to vector<32x32xf32>
    %45 = arith.mulf %40, %44 : vector<32x32xf32>
    %46 = arith.truncf %45 : vector<32x32xf32> to vector<32x32xbf16>
    %cst_14 = arith.constant dense<0.000000e+00> : vector<32x64xf32>
    %47 = tpu.matmul %46, %33, %cst_14 {dimension_numbers = #tpu.dot_dimension_numbers<[1], [0], [0], [1], [0, 0, 1, 1], [], []>} : vector<32x32xbf16>, vector<32x64xbf16>, vector<32x64xf32> -> vector<32x64xf32>
    %48 = tpu.concatenate %27, %47 in 1 : vector<32x64xf32>, vector<32x64xf32> -> vector<32x128xf32>
    %49 = arith.truncf %48 : vector<32x128xf32> to vector<32x128xbf16>
    %c0_15 = arith.constant 0 : index
    %c0_16 = arith.constant 0 : index
    %50 = vector.load %arg4[%c0_15, %c0_16] : memref<128x128xbf16, #tpu.memory_space<vmem>>, vector<128x128xbf16>
    %cst_17 = arith.constant dense<0.000000e+00> : vector<32x128xf32>
    %51 = tpu.matmul %49, %50, %cst_17 {dimension_numbers = #tpu.dot_dimension_numbers<[1], [0], [0], [1], [0, 0, 1, 1], [], []>} : vector<32x128xbf16>, vector<128x128xbf16>, vector<32x128xf32> -> vector<32x128xf32>
    %c0_18 = arith.constant 0 : index
    %c0_19 = arith.constant 0 : index
    %52 = vector.load %arg5[%c0_18, %c0_19] : memref<1x128xf32, #tpu.memory_space<vmem>>, vector<1x128xf32>
    %53 = vector.broadcast %52 : vector<1x128xf32> to vector<32x128xf32>
    %54 = arith.addf %51, %53 : vector<32x128xf32>
    %55 = arith.addf %0, %54 : vector<32x128xf32>
    %c0_20 = arith.constant 0 : index
    %c0_21 = arith.constant 0 : index
    %56 = vector.load %arg6[%c0_20, %c0_21] : memref<1x128xf32, #tpu.memory_space<vmem>>, vector<1x128xf32>
    %c0_22 = arith.constant 0 : index
    %c0_23 = arith.constant 0 : index
    %57 = vector.load %arg7[%c0_22, %c0_23] : memref<1x128xf32, #tpu.memory_space<vmem>>, vector<1x128xf32>
    %cst_24 = arith.constant dense<0.000000e+00> : vector<32xf32>
    %58 = vector.multi_reduction <add>, %55, %cst_24 [1] : vector<32x128xf32> to vector<32xf32>
    %59 = vector.shape_cast %58 : vector<32xf32> to vector<32x1xf32>
    %cst_25 = arith.constant 1.280000e+02 : f32
    %60 = vector.broadcast %cst_25 : f32 to vector<32x1xf32>
    %61 = arith.divf %59, %60 : vector<32x1xf32>
    %62 = vector.broadcast %61 : vector<32x1xf32> to vector<32x128xf32>
    %63 = arith.subf %55, %62 : vector<32x128xf32>
    %64 = arith.mulf %63, %63 : vector<32x128xf32>
    %cst_26 = arith.constant dense<0.000000e+00> : vector<32xf32>
    %65 = vector.multi_reduction <add>, %64, %cst_26 [1] : vector<32x128xf32> to vector<32xf32>
    %66 = vector.shape_cast %65 : vector<32xf32> to vector<32x1xf32>
    %cst_27 = arith.constant 1.280000e+02 : f32
    %67 = vector.broadcast %cst_27 : f32 to vector<32x1xf32>
    %68 = arith.divf %66, %67 : vector<32x1xf32>
    %69 = vector.broadcast %61 : vector<32x1xf32> to vector<32x128xf32>
    %70 = arith.subf %55, %69 : vector<32x128xf32>
    %cst_28 = arith.constant 9.99999974E-6 : f32
    %71 = vector.broadcast %cst_28 : f32 to vector<32x1xf32>
    %72 = arith.addf %68, %71 : vector<32x1xf32>
    %73 = math.rsqrt %72 : vector<32x1xf32>
    %74 = vector.broadcast %73 : vector<32x1xf32> to vector<32x128xf32>
    %75 = arith.mulf %70, %74 : vector<32x128xf32>
    %76 = vector.broadcast %56 : vector<1x128xf32> to vector<32x128xf32>
    %77 = arith.mulf %75, %76 : vector<32x128xf32>
    %78 = vector.broadcast %57 : vector<1x128xf32> to vector<32x128xf32>
    %79 = arith.addf %77, %78 : vector<32x128xf32>
    %80 = arith.truncf %79 : vector<32x128xf32> to vector<32x128xbf16>
    %c0_29 = arith.constant 0 : index
    %c0_30 = arith.constant 0 : index
    %81 = vector.load %arg8[%c0_29, %c0_30] : memref<128x256xbf16, #tpu.memory_space<vmem>>, vector<128x256xbf16>
    %cst_31 = arith.constant dense<0.000000e+00> : vector<32x256xf32>
    %82 = tpu.matmul %80, %81, %cst_31 {dimension_numbers = #tpu.dot_dimension_numbers<[1], [0], [0], [1], [0, 0, 1, 1], [], []>} : vector<32x128xbf16>, vector<128x256xbf16>, vector<32x256xf32> -> vector<32x256xf32>
    %c0_32 = arith.constant 0 : index
    %c0_33 = arith.constant 0 : index
    %83 = vector.load %arg9[%c0_32, %c0_33] : memref<1x256xf32, #tpu.memory_space<vmem>>, vector<1x256xf32>
    %84 = vector.broadcast %83 : vector<1x256xf32> to vector<32x256xf32>
    %85 = arith.addf %82, %84 : vector<32x256xf32>
    %86 = arith.mulf %85, %85 : vector<32x256xf32>
    %87 = arith.mulf %85, %86 : vector<32x256xf32>
    %cst_34 = arith.constant 4.471500e-02 : f32
    %88 = vector.broadcast %cst_34 : f32 to vector<32x256xf32>
    %89 = arith.mulf %88, %87 : vector<32x256xf32>
    %90 = arith.addf %85, %89 : vector<32x256xf32>
    %cst_35 = arith.constant 0.797884583 : f32
    %91 = vector.broadcast %cst_35 : f32 to vector<32x256xf32>
    %92 = arith.mulf %91, %90 : vector<32x256xf32>
    %93 = math.tanh %92 : vector<32x256xf32>
    %cst_36 = arith.constant 1.000000e+00 : f32
    %94 = vector.broadcast %cst_36 : f32 to vector<32x256xf32>
    %95 = arith.addf %94, %93 : vector<32x256xf32>
    %cst_37 = arith.constant 5.000000e-01 : f32
    %96 = vector.broadcast %cst_37 : f32 to vector<32x256xf32>
    %97 = arith.mulf %96, %95 : vector<32x256xf32>
    %98 = arith.mulf %85, %97 : vector<32x256xf32>
    %99 = arith.truncf %98 : vector<32x256xf32> to vector<32x256xbf16>
    %c0_38 = arith.constant 0 : index
    %c0_39 = arith.constant 0 : index
    %100 = vector.load %arg10[%c0_38, %c0_39] : memref<256x128xbf16, #tpu.memory_space<vmem>>, vector<256x128xbf16>
    %cst_40 = arith.constant dense<0.000000e+00> : vector<32x128xf32>
    %101 = tpu.matmul %99, %100, %cst_40 {dimension_numbers = #tpu.dot_dimension_numbers<[1], [0], [0], [1], [0, 0, 1, 1], [], []>} : vector<32x256xbf16>, vector<256x128xbf16>, vector<32x128xf32> -> vector<32x128xf32>
    %c0_41 = arith.constant 0 : index
    %c0_42 = arith.constant 0 : index
    %102 = vector.load %arg11[%c0_41, %c0_42] : memref<1x128xf32, #tpu.memory_space<vmem>>, vector<1x128xf32>
    %103 = vector.broadcast %102 : vector<1x128xf32> to vector<32x128xf32>
    %104 = arith.addf %101, %103 : vector<32x128xf32>
    %105 = arith.addf %79, %104 : vector<32x128xf32>
    %c0_43 = arith.constant 0 : index
    %c0_44 = arith.constant 0 : index
    %106 = vector.load %arg12[%c0_43, %c0_44] : memref<1x128xf32, #tpu.memory_space<vmem>>, vector<1x128xf32>
    %c0_45 = arith.constant 0 : index
    %c0_46 = arith.constant 0 : index
    %107 = vector.load %arg13[%c0_45, %c0_46] : memref<1x128xf32, #tpu.memory_space<vmem>>, vector<1x128xf32>
    %cst_47 = arith.constant dense<0.000000e+00> : vector<32xf32>
    %108 = vector.multi_reduction <add>, %105, %cst_47 [1] : vector<32x128xf32> to vector<32xf32>
    %109 = vector.shape_cast %108 : vector<32xf32> to vector<32x1xf32>
    %cst_48 = arith.constant 1.280000e+02 : f32
    %110 = vector.broadcast %cst_48 : f32 to vector<32x1xf32>
    %111 = arith.divf %109, %110 : vector<32x1xf32>
    %112 = vector.broadcast %111 : vector<32x1xf32> to vector<32x128xf32>
    %113 = arith.subf %105, %112 : vector<32x128xf32>
    %114 = arith.mulf %113, %113 : vector<32x128xf32>
    %cst_49 = arith.constant dense<0.000000e+00> : vector<32xf32>
    %115 = vector.multi_reduction <add>, %114, %cst_49 [1] : vector<32x128xf32> to vector<32xf32>
    %116 = vector.shape_cast %115 : vector<32xf32> to vector<32x1xf32>
    %cst_50 = arith.constant 1.280000e+02 : f32
    %117 = vector.broadcast %cst_50 : f32 to vector<32x1xf32>
    %118 = arith.divf %116, %117 : vector<32x1xf32>
    %119 = vector.broadcast %111 : vector<32x1xf32> to vector<32x128xf32>
    %120 = arith.subf %105, %119 : vector<32x128xf32>
    %cst_51 = arith.constant 9.99999974E-6 : f32
    %121 = vector.broadcast %cst_51 : f32 to vector<32x1xf32>
    %122 = arith.addf %118, %121 : vector<32x1xf32>
    %123 = math.rsqrt %122 : vector<32x1xf32>
    %124 = vector.broadcast %123 : vector<32x1xf32> to vector<32x128xf32>
    %125 = arith.mulf %120, %124 : vector<32x128xf32>
    %126 = vector.broadcast %106 : vector<1x128xf32> to vector<32x128xf32>
    %127 = arith.mulf %125, %126 : vector<32x128xf32>
    %128 = vector.broadcast %107 : vector<1x128xf32> to vector<32x128xf32>
    %129 = arith.addf %127, %128 : vector<32x128xf32>
    %c0_52 = arith.constant 0 : index
    %c0_53 = arith.constant 0 : index
    %130 = vector.load %arg14[%c0_52, %c0_53] : memref<32x128xf32, #tpu.memory_space<vmem>>, vector<32x128xf32>
    tpu.vector_store %arg14[%c0_52, %c0_53], %129 {strides = array<i32>} : memref<32x128xf32, #tpu.memory_space<vmem>>, vector<32x128xf32>,
    return
  }
}

module attributes {stable_mosaic.version = 11 : i64} {
  func.func @_classifier_kernel(%arg0: memref<2x128xf32, #tpu.memory_space<vmem>>, %arg1: memref<128x128xbf16, #tpu.memory_space<vmem>>, %arg2: memref<1x128xf32, #tpu.memory_space<vmem>>, %arg3: memref<128x128xbf16, #tpu.memory_space<vmem>>, %arg4: memref<1x128xf32, #tpu.memory_space<vmem>>, %arg5: memref<2x128xf32, #tpu.memory_space<vmem>>) attributes {dimension_semantics = [], scalar_prefetch = 0 : i64, scratch_operands = 0 : i64, tpu.core_type = #tpu.core_type<tc>} {
    %c0 = arith.constant 0 : index
    %c0_0 = arith.constant 0 : index
    %0 = vector.load %arg0[%c0, %c0_0] : memref<2x128xf32, #tpu.memory_space<vmem>>, vector<2x128xf32>
    %1 = arith.truncf %0 : vector<2x128xf32> to vector<2x128xbf16>
    %c0_1 = arith.constant 0 : index
    %c0_2 = arith.constant 0 : index
    %2 = vector.load %arg1[%c0_1, %c0_2] : memref<128x128xbf16, #tpu.memory_space<vmem>>, vector<128x128xbf16>
    %cst = arith.constant dense<0.000000e+00> : vector<2x128xf32>
    %3 = tpu.matmul %1, %2, %cst {dimension_numbers = #tpu.dot_dimension_numbers<[1], [0], [0], [1], [0, 0, 1, 1], [], []>} : vector<2x128xbf16>, vector<128x128xbf16>, vector<2x128xf32> -> vector<2x128xf32>
    %c0_3 = arith.constant 0 : index
    %c0_4 = arith.constant 0 : index
    %4 = vector.load %arg2[%c0_3, %c0_4] : memref<1x128xf32, #tpu.memory_space<vmem>>, vector<1x128xf32>
    %5 = vector.broadcast %4 : vector<1x128xf32> to vector<2x128xf32>
    %6 = arith.addf %3, %5 : vector<2x128xf32>
    %7 = arith.truncf %6 : vector<2x128xf32> to vector<2x128xbf16>
    %c0_5 = arith.constant 0 : index
    %c0_6 = arith.constant 0 : index
    %8 = vector.load %arg3[%c0_5, %c0_6] : memref<128x128xbf16, #tpu.memory_space<vmem>>, vector<128x128xbf16>
    %cst_7 = arith.constant dense<0.000000e+00> : vector<2x128xf32>
    %9 = tpu.matmul %7, %8, %cst_7 {dimension_numbers = #tpu.dot_dimension_numbers<[1], [0], [0], [1], [0, 0, 1, 1], [], []>} : vector<2x128xbf16>, vector<128x128xbf16>, vector<2x128xf32> -> vector<2x128xf32>
    %c0_8 = arith.constant 0 : index
    %c0_9 = arith.constant 0 : index
    %10 = vector.load %arg4[%c0_8, %c0_9] : memref<1x128xf32, #tpu.memory_space<vmem>>, vector<1x128xf32>
    %11 = vector.broadcast %10 : vector<1x128xf32> to vector<2x128xf32>
    %12 = arith.addf %9, %11 : vector<2x128xf32>
    %c0_10 = arith.constant 0 : index
    %c0_11 = arith.constant 0 : index
    %13 = vector.load %arg5[%c0_10, %c0_11] : memref<2x128xf32, #tpu.memory_space<vmem>>, vector<2x128xf32>
    tpu.vector_store %arg5[%c0_10, %c0_11], %12 {strides = array<i32>} : memref<2x128xf32, #tpu.memory_space<vmem>>, vector<2x128xf32>,
    return
  }
}

</mosaic_0001>

<bundles_post_ra>
// kernel: phobert_feedforward.4
= control target key start
LH: loop header
LB: loop body
LE: loop exit
PB: predicated region body
PF: predicated region fallthrough
CT: control target
= control target key end

     0   :  { %s153_s0 = inlined_call_operand.vmem [shape: f32[32,128], index: 0, kind: input, shape index: {}]   ;;  %s154_s1 = inlined_call_operand.vmem [shape: f32[1,128], index: 1, kind: input, shape index: {}]   ;;  %s155_s2 = inlined_call_operand.vmem [shape: f32[1,128], index: 2, kind: input, shape index: {}]   ;;  %s156_s3 = inlined_call_operand.vmem [shape: f32[32,128], index: 3, kind: output, shape index: {}]  }
   0x1   :  { %v14_v0 = vld [vmem:[%s153_s0] sm:$0xff]  ;;  %v16_v1 = vld [vmem:[%s153_s0 + $0x10] sm:$0xff]  ;;  %v15_v2 = vld [vmem:[%s153_s0 + $0x8] sm:$0xff] }
   0x2   :  { %20 = vadd.xlane.f32.xlu0 %v14_v0  ;;  %24 = vadd.xlane.f32.xlu1 %v16_v1  ;;  %v17_v3 = vld [vmem:[%s153_s0 + $0x18] sm:$0xff]  ;;  %v93_v33 = vld [vmem:[%s154_s1] ss:$0 sm:$0xff] }
   0x3   :  { %v94_v35 = vld [vmem:[%s155_s2] ss:$0 sm:$0xff] }
   0x6   :  { %22 = vadd.xlane.f32.xlu0 %v15_v2  ;;  %26 = vadd.xlane.f32.xlu1 %v17_v3 }
  0x8f   :  { %v21_v4 = vpop.xlane.xlu0 %20  ;;  %v25_v5 = vpop.xlane.xlu1 %24 }
  0x90   :  { %v29_v6 = vmul.f32 0.0078125, %v21_v4  ;;  %v31_v7 = vmul.f32 0.0078125, %v25_v5 }
  0x92   :  { %v33_v8 = vsub.f32 %v14_v0, %v29_v6  ;;  %v35_v9 = vsub.f32 %v16_v1, %v31_v7 }
  0x93   :  { %v23_v10 = vpop.xlane.xlu0 %22  ;;  %v27_v11 = vpop.xlane.xlu1 %26 }
  0x94   :  { %v30_v12 = vmul.f32 0.0078125, %v23_v10  ;;  %v37_v13 = vmul.f32 %v33_v8, %v33_v8  ;;  %v32_v14 = vmul.f32 0.0078125, %v27_v11  ;;  %v39_v17 = vmul.f32 %v35_v9, %v35_v9 }
  0x96   :  { %v34_v15 = vsub.f32 %v15_v2, %v30_v12  ;;  %41 = vadd.xlane.f32.xlu0 %v37_v13  ;;  %v36_v16 = vsub.f32 %v17_v3, %v32_v14 }
  0x98   :  { %v38_v18 = vmul.f32 %v34_v15, %v34_v15  ;;  %v40_v19 = vmul.f32 %v36_v16, %v36_v16 }
  0x9a   :  { %45 = vadd.xlane.f32.xlu0 %v39_v17  ;;  %43 = vadd.xlane.f32.xlu1 %v38_v18 }
  0x9e   :  { %47 = vadd.xlane.f32.xlu1 %v40_v19 }
 0x123   :  { %v42_v20 = vpop.xlane.xlu0 %41 }
 0x124   :  { %v49_v21 = vmul.f32 0.0078125, %v42_v20 }
 0x126   :  { %v53_v22 = vadd.f32 1e-05, %v49_v21 }
 0x127   :  { %v44_v23 = vpop.xlane.xlu1 %43  ;;  %v46_v24 = vpop.xlane.xlu0 %45 }
 0x128   :  { %95 = vrsqrt.f32 %v53_v22  ;;  %v50_v25 = vmul.f32 0.0078125, %v44_v23  ;;  %v51_v26 = vmul.f32 0.0078125, %v46_v24 }
 0x12a   :  { %v54_v27 = vadd.f32 1e-05, %v50_v25  ;;  %v55_v28 = vadd.f32 1e-05, %v51_v26 }
 0x12b   :  { %v48_v29 = vpop.xlane.xlu1 %47 }
 0x12c   :  { %97 = vrsqrt.f32 %v54_v27  ;;  %v52_v30 = vmul.f32 0.0078125, %v48_v29 }
 0x12d   :  { %99 = vrsqrt.f32 %v55_v28 }
 0x12e   :  { %v56_v31 = vadd.f32 1e-05, %v52_v30 }
 0x130   :  { %101 = vrsqrt.f32 %v56_v31 }
 0x132   :  { %v96_v32 = vpop.eup %95 }
 0x133   :  { %v61_v34 = vmul.f32 %v96_v32, %v33_v8 }
 0x135   :  { %v71_v36 = vmul.f32 %v93_v33, %v61_v34 }
 0x136   :  { %v98_v37 = vpop.eup %97 }
 0x137   :  { %v100_v38 = vpop.eup %99  ;;  %v81_v39 = vadd.f32 %v94_v35, %v71_v36  ;;  %v62_v40 = vmul.f32 %v98_v37, %v34_v15 }
 0x138   :  { %v63_v41 = vmul.f32 %v100_v38, %v35_v9 }
 0x139   :  { %85 = vst [vmem:[%s156_s3] sm:$0xff] %v81_v39  ;;  %v72_v42 = vmul.f32 %v93_v33, %v62_v40 }
 0x13a   :  { %v102_v43 = vpop.eup %101  ;;  %v73_v44 = vmul.f32 %v93_v33, %v63_v41 }
 0x13b   :  { %v82_v45 = vadd.f32 %v94_v35, %v72_v42  ;;  %v64_v46 = vmul.f32 %v102_v43, %v36_v16 }
 0x13c   :  { %v83_v47 = vadd.f32 %v94_v35, %v73_v44 }
 0x13d   :  { %86 = vst [vmem:[%s156_s3 + $0x8] sm:$0xff] %v82_v45  ;;  %v74_v48 = vmul.f32 %v93_v33, %v64_v46 }
 0x13e   :  { %87 = vst [vmem:[%s156_s3 + $0x10] sm:$0xff] %v83_v47 }
 0x13f   :  { %v84_v49 = vadd.f32 %v94_v35, %v74_v48 }
 0x141   :  { %88 = vst [vmem:[%s156_s3 + $0x18] sm:$0xff] %v84_v49 }

// kernel: phobert_feedforward.7
= control target key start
LH: loop header
LB: loop body
LE: loop exit
PB: predicated region body
PF: predicated region fallthrough
CT: control target
= control target key end

     0   :  { %v381_v1 = vmov 0.0   ;;  %vm382_vm0 = vmmov 0   ;;  %s483_s0 = inlined_call_operand.vmem [shape: f32[2,128], index: 0, kind: input, shape index: {}]   ;;  %s484_s1 = inlined_call_operand.vmem [shape: bf16[128,128], index: 1, kind: input, shape index: {}]   ;;  %s485_s2 = inlined_call_operand.vmem [shape: f32[1,128], index: 2, kind: input, shape index: {}]   ;;  %s486_s3 = inlined_call_operand.vmem [shape: bf16[128,128], index: 3, kind: input, shape index: {}]   ;;  %s487_s4 = inlined_call_operand.vmem [shape: f32[1,128], index: 4, kind: input, shape index: {}]   ;;  %s488_s5 = inlined_call_operand.hbm [shape: f32[2,128], index: 5, kind: output, shape index: {}]  }
   0x1   :  { %v341_v0 = vld [vmem:[%s484_s1] sm:$0xff]   ;;  %298 = vmatprep.subr.bf16.mxu0 %v381_v1  ;;  %318 = vmatprep.subr.bf16.mxu1 %v381_v1  ;;  %v342_v2 = vld [vmem:[%s484_s1 + $0x8] sm:$0xff]   ;;  %v343_v3 = vld [vmem:[%s484_s1 + $0x10] sm:$0xff]  }
   0x2   :  { %299 = vmatpush3.bf16.msra.mxu0 %v341_v0  ;;  %314 = vmatprep.mubr.msk.bf16.mxu0 %vm382_vm0, %v381_v1  ;;  %v349_v4 = vld [vmem:[%s486_s3] sm:$0xff]   ;;  %v344_v5 = vld [vmem:[%s484_s1 + $0x18] sm:$0xff]   ;;  %v350_v6 = vld [vmem:[%s486_s3 + $0x8] sm:$0xff]  }
   0x3   :  { %300 = vmatprep.subr.bf16.mxu0 %v381_v1  ;;  %334 = vmatprep.mubr.msk.bf16.mxu1 %vm382_vm0, %v381_v1  ;;  %v345_v7 = vld [vmem:[%s484_s1 + $0x20] sm:$0xff]   ;;  %v351_v8 = vld [vmem:[%s486_s3 + $0x10] sm:$0xff]  }
   0x4   :  { %319 = vmatpush3.bf16.msra.mxu1 %v349_v4 }
   0x5   :  { %320 = vmatprep.subr.bf16.mxu1 %v381_v1 }
   0x6   :  { %301 = vmatpush3.bf16.msra.mxu0 %v342_v2 }
   0x7   :  { %302 = vmatprep.subr.bf16.mxu0 %v381_v1 }
   0x8   :  { %321 = vmatpush3.bf16.msra.mxu1 %v350_v6 }
   0x9   :  { %322 = vmatprep.subr.bf16.mxu1 %v381_v1 }
   0xa   :  { %303 = vmatpush3.bf16.msra.mxu0 %v343_v3 }
   0xb   :  { %304 = vmatprep.subr.bf16.mxu0 %v381_v1 }
   0xe   :  { %305 = vmatpush3.bf16.msra.mxu0 %v344_v5 }
   0xf   :  { %306 = vmatprep.subr.bf16.mxu0 %v381_v1 }
  0x10   :  { %10 = vsyncpa [#allocation3], 0  ;;  %v346_v9 = vld [vmem:[%s484_s1 + $0x28] sm:$0xff]   ;;  %323 = vmatpush3.bf16.msra.mxu1 %v351_v8  ;;  %v352_v10 = vld [vmem:[%s486_s3 + $0x18] sm:$0xff]   ;;  %s383_s29 = smov [#allocation2]  }
  0x11   :  { %324 = vmatprep.subr.bf16.mxu1 %v381_v1  ;;  %v347_v11 = vld [vmem:[%s484_s1 + $0x30] sm:$0xff]   ;;  %v353_v12 = vld [vmem:[%s486_s3 + $0x20] sm:$0xff]   ;;  %v348_v13 = vld [vmem:[%s484_s1 + $0x38] sm:$0xff]   ;;  %s254_s30 = sshll.u32 %s383_s29, 4  ;;  %s255_s30 = int_to_ptr.vmem [resolvable:$true] %s254_s30 }
  0x12   :  { %307 = vmatpush3.bf16.msra.mxu0 %v345_v7  ;;  %v22_v14 = vld [vmem:[%s483_s0] sm:$0x3]  ;;  %v354_v15 = vld [vmem:[%s486_s3 + $0x28] sm:$0xff]   ;;  %v355_v17 = vld [vmem:[%s486_s3 + $0x30] sm:$0xff]   ;;  %p362_p1 = scmp.lt.s32.totalorder %s255_s30, %s255_s30 }
  0x13   :  { %308 = vmatprep.subr.bf16.mxu0 %v381_v1  ;;  %v23_v16 = vpack.c.bf16 %v22_v14, %v22_v14  ;;  %v356_v18 = vld [vmem:[%s486_s3 + $0x38] sm:$0xff]   ;;  %v262_v19 = vld [vmem:[%s485_s2] ss:$0 sm:$0xff]  ;;  %s357_s2 = scalar_lea.vmem %s255_s30, 32 }
  0x14   :  { %325 = vmatpush3.bf16.msra.mxu1 %v352_v10  ;;  %v271_v26 = vld [vmem:[%s487_s4] ss:$0 sm:$0xff]  ;;  %p358_p0 = scmp.ne.s32.totalorder %s255_s30, %s357_s2  ;;  %p363_p2 = scmp.lt.s32.totalorder %s357_s2, %s357_s2 }
  0x15   :  { %326 = vmatprep.subr.bf16.mxu1 %v381_v1 }
  0x16   :  { %309 = vmatpush3.bf16.msra.mxu0 %v346_v9  ;;  %p364_p3 = por %p363_p2, %p362_p1 }
  0x17   :  { %310 = vmatprep.subr.bf16.mxu0 %v381_v1 }
  0x18   :  { %327 = vmatpush3.bf16.msra.mxu1 %v353_v12  ;;  %p365_p4 = pnand %p364_p3, %p358_p0 }
  0x19   :  { %328 = vmatprep.subr.bf16.mxu1 %v381_v1 }
  0x1a   :  { %311 = vmatpush3.bf16.msra.mxu0 %v347_v11 }
  0x1b   :  { %312 = vmatprep.subr.bf16.mxu0 %v381_v1 }
  0x1c   :  { %329 = vmatpush3.bf16.msra.mxu1 %v354_v15 }
  0x1d   :  { %330 = vmatprep.subr.bf16.mxu1 %v381_v1 }
  0x1e   :  { %313 = vmatpush3.bf16.msra.mxu0 %v348_v13 }
  0x20   :  { %331 = vmatpush3.bf16.msra.mxu1 %v355_v17 }
  0x21   :  { %315 = vmatmul.mubr.bf16.vlgmr.msra.gmra.mrb[0].mxu0 %v23_v16  ;;  %332 = vmatprep.subr.bf16.mxu1 %v381_v1 }
  0x24   :  { %333 = vmatpush3.bf16.msra.mxu1 %v356_v18 }
  0xf4   :  { %v129_v20 = vpop.f32.mrb[0].mxu0 }
  0xf5   :  { %v130_v21 = vadd.f32 %v262_v19, %v129_v20  ;;  %v316_v22 = vpop.f32.mrb[1].mxu0 }
  0xf6   :  { %v132_v23 = vpop.f32.mrb[2].mxu0 }
  0xf7   :  { %v135_v24 = vpack.c.bf16 %v130_v21, %v130_v21  ;;  %v317_v25 = vpop.f32.mrb[3].mxu0 }
  0xf9   :  { %335 = vmatmul.mubr.bf16.vlgmr.msra.gmra.mrb[0].mxu1 %v135_v24 }
 0x1cc   :  { %v241_v27 = vpop.f32.mrb[0].mxu1 }
 0x1cd   :  { %v242_v28 = vadd.f32 %v271_v26, %v241_v27  ;;  %v336_v29 = vpop.f32.mrb[1].mxu1 }
 0x1ce   :  { %v244_v30 = vpop.f32.mrb[2].mxu1 }
 0x1cf   :  { %247 = vst [vmem:[#allocation2] sm:$0x3] %v242_v28  ;;  %v337_v31 = vpop.f32.mrb[3].mxu1 }
 0x1d0   :  { %368 = shalt.err (!%p365_p4)
}
 0x1d1   :  { %s369_s4 = scalar_lea.hbm %s488_s5, 32 }
 0x1d2   :  { %p370_p5 = scmp.ne.s32.totalorder %s488_s5, %s369_s4  ;;  %p373_p6 = scmp.lt.u32.totalorder %s369_s4, %s488_s5 }
 0x1d4   :  { %p375_p7 = pnand %p373_p6, %p370_p5 }
 0x1d6   :  { %378 = shalt.err (!%p375_p7)
}
 0x1d7   :  { %257 = dma.vmem_to_hbm [thread:$0]  %s255_s30, 32, %s488_s5, [#allocation3]  }
 0x1d8   :  { %379 = dma.done.wait [#allocation3], 32  }
 0x1d9   :  { %380 = vsyncadd [#allocation3], 4294967264 }
 0x1da   :  { %261 = vsyncpa [#allocation3], 1 }

// kernel: phobert_feedforward.5
= control target key start
LH: loop header
LB: loop body
LE: loop exit
PB: predicated region body
PF: predicated region fallthrough
CT: control target
= control target key end

     0   :  { %v1777_v1 = vmov 0   ;;  %v92_v31 = vlaneseq  ;;  %vm343_vm0 = vcmask 523264   ;;  %vm405_vm1 = vcmask 261120   ;;  %s2316_s2 = inlined_call_operand.vmem [shape: bf16[128,384], index: 2, kind: input, shape index: {}]   ;;  %s2317_s0 = inlined_call_operand.vmem [shape: f32[32,128], index: 0, kind: input, shape index: {}]   ;;  %s2318_s3 = inlined_call_operand.vmem [shape: f32[1,384], index: 3, kind: input, shape index: {}]   ;;  %s2319_s1 = inlined_call_operand.vmem [shape: f32[32,32], index: 1, kind: input, shape index: {}]   ;;  %s2320_s4 = inlined_call_operand.vmem [shape: bf16[128,128], index: 4, kind: input, shape index: {}]   ;;  %s2321_s5 = inlined_call_operand.vmem [shape: f32[1,128], index: 5, kind: input, shape index: {}]   ;;  %s2322_s8 = inlined_call_operand.vmem [shape: bf16[128,256], index: 8, kind: input, shape index: {}]   ;;  %s2323_s6 = inlined_call_operand.vmem [shape: f32[1,128], index: 6, kind: input, shape index: {}]   ;;  %s2324_s7 = inlined_call_operand.vmem [shape: f32[1,128], index: 7, kind: input, shape index: {}]   ;;  %s2325_s10 = inlined_call_operand.vmem [shape: bf16[256,128], index: 10, kind: input, shape index: {}]   ;;  %s2326_s9 = inlined_call_operand.vmem [shape: f32[1,256], index: 9, kind: input, shape index: {}]   ;;  %s2327_s11 = inlined_call_operand.vmem [shape: f32[1,128], index: 11, kind: input, shape index: {}]   ;;  %s2328_s12 = inlined_call_operand.vmem [shape: f32[1,128], index: 12, kind: input, shape index: {}]   ;;  %s2329_s13 = inlined_call_operand.vmem [shape: f32[1,128], index: 13, kind: input, shape index: {}]   ;;  %s2330_s14 = inlined_call_operand.vmem [shape: f32[32,128], index: 14, kind: output, shape index: {}]  }
   0x1   :  { %v1633_v0 = vld [vmem:[%s2316_s2 + $0x4] ss:$12 sps:$4 sm:$0xff]   ;;  %267 = vmatprep.mubr.bf16.mxu0 %v1777_v1  ;;  %v1635_v2 = vld [vmem:[%s2316_s2] ss:$12 sps:$4 sm:$0xff]   ;;  %v1636_v3 = vld [vmem:[%s2316_s2 + $0x1c] ss:$12 sps:$4 sm:$0xff]  }
   0x2   :  { %235 = vmatprep.subr.bf16.mxu0 %v1633_v0  ;;  %v1638_v4 = vld [vmem:[%s2316_s2 + $0x18] ss:$12 sps:$4 sm:$0xff]   ;;  %v1639_v5 = vld [vmem:[%s2316_s2 + $0x34] ss:$12 sps:$4 sm:$0xff]   ;;  %v1641_v6 = vld [vmem:[%s2316_s2 + $0x30] ss:$12 sps:$4 sm:$0xff]  }
   0x3   :  { %236 = vmatpush1.bf16.msra.mxu0 %v1635_v2  ;;  %v1642_v7 = vld [vmem:[%s2316_s2 + $0x4c] ss:$12 sps:$4 sm:$0xff]   ;;  %v1879_v8 = vld [vmem:[%s2317_s0] sm:$0xff]  ;;  %v1644_v9 = vld [vmem:[%s2316_s2 + $0x48] ss:$12 sps:$4 sm:$0xff]   ;;  %v1952_v32 = vshrl.u32 %v92_v31, 7 }
   0x4   :  { %237 = vmatprep.subr.bf16.mxu0 %v1636_v3  ;;  %v1645_v10 = vld [vmem:[%s2316_s2 + $0x64] ss:$12 sps:$4 sm:$0xff]   ;;  %v1890_v11 = vld [vmem:[%s2317_s0 + $0x8] sm:$0xff]  ;;  %v1651_v19 = vld [vmem:[%s2316_s2 + $0x94] ss:$12 sps:$4 sm:$0xff]  }
   0x5   :  { %v56_v12 = vpack.c.bf16 %v1890_v11, %v1879_v8  ;;  %v1657_v13 = vld [vmem:[%s2316_s2 + $0x8] ss:$12 sps:$4 sm:$0xff]   ;;  %v1658_v14 = vld [vmem:[%s2316_s2 + $0x20] ss:$12 sps:$4 sm:$0xff]   ;;  %v1659_v17 = vld [vmem:[%s2316_s2 + $0x38] ss:$12 sps:$4 sm:$0xff]  }
   0x6   :  { %v1647_v15 = vld [vmem:[%s2316_s2 + $0x60] ss:$12 sps:$4 sm:$0xff]   ;;  %1545 = vmatprep.subr.bf16.mxu1 %v1657_v13  ;;  %v1648_v16 = vld [vmem:[%s2316_s2 + $0x7c] ss:$12 sps:$4 sm:$0xff]   ;;  %v1650_v18 = vld [vmem:[%s2316_s2 + $0x78] ss:$12 sps:$4 sm:$0xff]  }
   0x7   :  { %238 = vmatpush1.bf16.msra.mxu0 %v1638_v4  ;;  %1561 = vmatprep.mubr.bf16.mxu1 %v56_v12  ;;  %v1660_v20 = vld [vmem:[%s2316_s2 + $0x50] ss:$12 sps:$4 sm:$0xff]   ;;  %v1654_v22 = vld [vmem:[%s2316_s2 + $0xac] ss:$12 sps:$4 sm:$0xff]   ;;  %v1661_v23 = vld [vmem:[%s2316_s2 + $0x68] ss:$12 sps:$4 sm:$0xff]  }
   0x8   :  { %239 = vmatprep.subr.bf16.mxu0 %v1639_v5  ;;  %1546 = vmatpush3.bf16.msra.mxu1 %v1657_v13  ;;  %v1653_v21 = vld [vmem:[%s2316_s2 + $0x90] ss:$12 sps:$4 sm:$0xff]   ;;  %v1656_v24 = vld [vmem:[%s2316_s2 + $0xa8] ss:$12 sps:$4 sm:$0xff]   ;;  %v1662_v25 = vld [vmem:[%s2316_s2 + $0x80] ss:$12 sps:$4 sm:$0xff]  }
   0x9   :  { %1547 = vmatprep.subr.bf16.mxu1 %v1658_v14  ;;  %v1663_v26 = vld [vmem:[%s2316_s2 + $0x98] ss:$12 sps:$4 sm:$0xff]   ;;  %v1940_v27 = vld [vmem:[%s2317_s0 + $0x10] sm:$0xff]  ;;  %v94_v33 = vsub.s32 0, %v1952_v32  ;;  %v90_v34 = vld [vmem:[%s2318_s3] sm:$0x7] }
   0xa   :  { %v1945_v28 = vld [vmem:[%s2317_s0 + $0x18] sm:$0xff]  ;;  %v98_v35 = vsub.s32 1, %v1952_v32  ;;  %v102_v48 = vsub.s32 2, %v1952_v32 }
   0xb   :  { %240 = vmatpush1.bf16.msra.mxu0 %v1641_v6  ;;  %v1664_v29 = vld [vmem:[%s2316_s2 + $0xb0] ss:$12 sps:$4 sm:$0xff]   ;;  %v57_v30 = vpack.c.bf16 %v1945_v28, %v1940_v27  ;;  %v95_v36 = vrot.slane %v90_v34, %v94_v33 }
   0xc   :  { %241 = vmatprep.subr.bf16.mxu0 %v1642_v7  ;;  %1548 = vmatpush3.bf16.msra.mxu1 %v1658_v14  ;;  %v99_v38 = vrot.slane %v90_v34, %v98_v35  ;;  %v103_v53 = vrot.slane %v90_v34, %v102_v48  ;;  %v2005_v14 = vld [vmem:[%s2319_s1 + $0x18] sm:$0xff] }
   0xd   :  { %1549 = vmatprep.subr.bf16.mxu1 %v1659_v17 }
   0xf   :  { %242 = vmatpush1.bf16.msra.mxu0 %v1644_v9 }
  0x10   :  { %243 = vmatprep.subr.bf16.mxu0 %v1645_v10  ;;  %1550 = vmatpush3.bf16.msra.mxu1 %v1659_v17  ;;  %v1995_v10 = vld [vmem:[%s2319_s1 + $0x10] sm:$0xff]  ;;  %v2011_v17 = vld [vmem:[%s2319_s1 + $0x8] sm:$0xff] }
  0x11   :  { %1551 = vmatprep.subr.bf16.mxu1 %v1660_v20 }
  0x13   :  { %244 = vmatpush1.bf16.msra.mxu0 %v1647_v15 }
  0x14   :  { %245 = vmatprep.subr.bf16.mxu0 %v1648_v16  ;;  %1552 = vmatpush3.bf16.msra.mxu1 %v1660_v20 }
  0x15   :  { %1553 = vmatprep.subr.bf16.mxu1 %v1661_v23 }
  0x17   :  { %246 = vmatpush1.bf16.msra.mxu0 %v1650_v18 }
  0x18   :  { %247 = vmatprep.subr.bf16.mxu0 %v1651_v19  ;;  %1554 = vmatpush3.bf16.msra.mxu1 %v1661_v23 }
  0x19   :  { %1555 = vmatprep.subr.bf16.mxu1 %v1662_v25 }
  0x1b   :  { %248 = vmatpush1.bf16.msra.mxu0 %v1653_v21 }
  0x1c   :  { %249 = vmatprep.subr.bf16.mxu0 %v1654_v22  ;;  %1556 = vmatpush3.bf16.msra.mxu1 %v1662_v25 }
  0x1d   :  { %1557 = vmatprep.subr.bf16.mxu1 %v1663_v26 }
  0x1f   :  { %250 = vmatpush1.bf16.msra.mxu0 %v1656_v24 }
  0x20   :  { %1558 = vmatpush3.bf16.msra.mxu1 %v1663_v26 }
  0x21   :  { %1559 = vmatprep.subr.bf16.mxu1 %v1664_v29 }
  0x22   :  { %268 = vmatmul.mubr.bf16.vlgmr.msra.gmra.mrb[0].mxu0 %v56_v12  ;;  %v2000_v12 = vld [vmem:[%s2319_s1] sm:$0xff]  ;;  %s1778_s1 = smov 64  }
  0x23   :  { %277 = vmatprep.mubr.bf16.mxu0 %v1777_v1 }
  0x24   :  { %1560 = vmatpush3.bf16.msra.mxu1 %v1664_v29 }
  0x27   :  { %1562 = vmatmul.mubr.bf16.vlgmr.msra.gmra.mrb[0].mxu1 %v57_v30 }
  0x2a   :  { %278 = vmatmul.mubr.bf16.gmra.mrb[4].mxu0 %v57_v30 }
  0xf5   :  { %v269_v37 = vpop.f32.mrb[0].mxu0 }
  0xf6   :  { %v271_v39 = vpop.f32.mrb[1].mxu0  ;;  %v270_v41 = vadd.f32 %v269_v37, %v95_v36 }
  0xf7   :  { %v273_v40 = vpop.f32.mrb[2].mxu0  ;;  %v272_v44 = vadd.f32 %v271_v39, %v99_v38 }
  0xf8   :  { %v274_v42 = vadd.f32 %v273_v40, %v95_v36  ;;  %v275_v43 = vpop.f32.mrb[3].mxu0 }
  0xf9   :  { %v276_v45 = vadd.f32 %v275_v43, %v99_v38 }
  0xfa   :  { %v1963_v46 = vpack.c.bf16 %v274_v42, %v270_v41  ;;  %v1563_v59 = vpop.f32.mrb[0].mxu1 }
  0xfb   :  { %v1965_v47 = vpack.c.bf16 %v276_v45, %v272_v44  ;;  %v331_v61 = vadd.f32 %v1563_v59, %v103_v53  ;;  %v322_v62 = vpop.f32.mrb[1].mxu1 }
  0xfc   :  { %1569 = vmatprep.mubr.msk.bf16.mxu1 %vm343_vm0, %v1963_v46  ;;  %v323_v0 = vadd.f32 %v322_v62, %v103_v53  ;;  %v1564_v2 = vpop.f32.mrb[2].mxu1 }
  0xfd   :  { %v279_v49 = vpop.f32.mrb[4].mxu0  ;;  %1617 = vmatprep.subr.msk.bf16.mxu1 %vm343_vm0, %v1965_v47  ;;  %v351_v50 = vsel %vm343_vm0, %v1965_v47, 0  ;;  %v334_v3 = vadd.f32 %v1564_v2, %v103_v53  ;;  %v325_v4 = vpop.f32.mrb[3].mxu1 }
  0xfe   :  { %v281_v51 = vpop.f32.mrb[5].mxu0  ;;  %1566 = vmatpush3.bf16.xpose.msra.mxu1 %v351_v50  ;;  %v280_v54 = vadd.f32 %v279_v49, %v95_v36  ;;  %v326_v6 = vadd.f32 %v325_v4, %v103_v53 }
  0xff   :  { %v283_v52 = vpop.f32.mrb[6].mxu0  ;;  %v282_v57 = vadd.f32 %v281_v51, %v99_v38  ;;  %v1982_v7 = vpack.c.bf16 %v334_v3, %v331_v61 }
 0x100   :  { %v284_v55 = vadd.f32 %v283_v52, %v95_v36  ;;  %v285_v56 = vpop.f32.mrb[7].mxu0  ;;  %v1984_v9 = vpack.c.bf16 %v326_v6, %v323_v0 }
 0x101   :  { %v286_v58 = vadd.f32 %v285_v56, %v99_v38 }
 0x102   :  { %v1974_v60 = vpack.c.bf16 %v284_v55, %v280_v54 }
 0x103   :  { %v1976_v63 = vpack.c.bf16 %v286_v58, %v282_v57 }
 0x105   :  { %1618 = vmatprep.subr.msk.bf16.mxu1 %vm343_vm0, %v1976_v63  ;;  %v354_v5 = vsel %vm343_vm0, %v1976_v63, 0 }
 0x106   :  { %1568 = vmatpush3.bf16.xpose.msra.mxu1 %v354_v5 }
 0x107   :  { %1573 = vmatprep.subr.bf16.mxu1 %v1984_v9 }
 0x10d   :  { %1570 = vmatmul.mubr.msk.bf16.vlgmr.msra.gmra.mrb[4].mxu1 %vm343_vm0, %v1974_v60 }
 0x10e   :  { %1574 = vmatpush3.bf16.msra.mxu1 %v1984_v9 }
 0x10f   :  { %1575 = vmatprep.subr.bf16.mxu1 %v1982_v7 }
 0x112   :  { %1576 = vmatpush3.bf16.msra.mxu1 %v1982_v7 }
 0x1e0   :  { %v1571_v13 = vpop.f32.mrb[4].mxu1 }
 0x1e1   :  { %v399_v15 = vadd.f32 %v1571_v13, %v1995_v10  ;;  %v390_v16 = vpop.f32.mrb[5].mxu1 }
 0x1e2   :  { %v391_v18 = vadd.f32 %v390_v16, %v2000_v12  ;;  %v1572_v19 = vpop.f32.mrb[6].mxu1 }
 0x1e3   :  { %v402_v20 = vadd.f32 %v1572_v19, %v2005_v14  ;;  %v393_v21 = vpop.f32.mrb[7].mxu1  ;;  %v412_v22 = vsel %vm405_vm1, %v399_v15, -inf }
 0x1e4   :  { %v394_v23 = vadd.f32 %v393_v21, %v2011_v17  ;;  %413 = vmax.xlane.f32.xlu1 %v412_v22  ;;  %v406_v24 = vsel %vm405_vm1, %v391_v18, -inf }
 0x1e5   :  { %407 = vmax.xlane.f32.xlu0 %v406_v24  ;;  %v415_v25 = vsel %vm405_vm1, %v402_v20, -inf }
 0x1e6   :  { %v409_v26 = vsel %vm405_vm1, %v394_v23, -inf }
 0x1e8   :  { %416 = vmax.xlane.f32.xlu1 %v415_v25 }
 0x1e9   :  { %410 = vmax.xlane.f32.xlu0 %v409_v26 }
 0x271   :  { %v414_v29 = vpop.xlane.xlu1 %413 }
 0x272   :  { %v420_v30 = vsub.f32 %v399_v15, %v414_v29  ;;  %v408_v31 = vpop.xlane.xlu0 %407 }
 0x273   :  { %v418_v34 = vsub.f32 %v391_v18, %v408_v31 }
 0x274   :  { %v426_v36 = vmul.f32 1.442695, %v420_v30 }
 0x275   :  { %v422_v37 = vmul.f32 1.442695, %v418_v34  ;;  %v417_v38 = vpop.xlane.xlu1 %416 }
 0x276   :  { %1713 = vpow2.f32 %v426_v36  ;;  %v421_v39 = vsub.f32 %v402_v20, %v417_v38  ;;  %v411_v40 = vpop.xlane.xlu0 %410 }
 0x277   :  { %v419_v41 = vsub.f32 %v394_v23, %v411_v40  ;;  %1715 = vpow2.f32 %v422_v37 }
 0x278   :  { %v428_v42 = vmul.f32 1.442695, %v421_v39 }
 0x279   :  { %v424_v43 = vmul.f32 1.442695, %v419_v41 }
 0x27b   :  { %1717 = vpow2.f32 %v424_v43 }
 0x27c   :  { %1719 = vpow2.f32 %v428_v42 }
 0x280   :  { %v1714_v44 = vpop.eup %1713 }
 0x281   :  { %v436_v45 = vsel %vm405_vm1, %v1714_v44, 0.0  ;;  %v1716_v48 = vpop.eup %1715 }
 0x282   :  { %437 = vadd.xlane.f32.xlu0 %v436_v45  ;;  %v430_v50 = vsel %vm405_vm1, %v1716_v48, 0.0 }
 0x285   :  { %v1718_v49 = vpop.eup %1717 }
 0x286   :  { %431 = vadd.xlane.f32.xlu0 %v430_v50  ;;  %v433_v51 = vsel %vm405_vm1, %v1718_v49, 0.0  ;;  %v1720_v52 = vpop.eup %1719 }
 0x287   :  { %434 = vadd.xlane.f32.xlu1 %v433_v51  ;;  %v439_v53 = vsel %vm405_vm1, %v1720_v52, 0.0 }
 0x28b   :  { %440 = vadd.xlane.f32.xlu1 %v439_v53 }
 0x29c   :  { %515 = vrot.lane.b32.xlu0 %v1965_v47, %s1778_s1  ;;  %517 = vrot.lane.b32.xlu1 %v1976_v63, %s1778_s1 }
 0x2a0   :  { %509 = vrot.lane.b32.xlu1 %v1963_v46, %s1778_s1 }
 0x2a4   :  { %511 = vrot.lane.b32.xlu1 %v1974_v60, %s1778_s1 }
 0x30f   :  { %v438_v54 = vpop.xlane.xlu0 %437 }
 0x313   :  { %v432_v55 = vpop.xlane.xlu0 %431 }
 0x314   :  { %1721 = vrcp.f32 %v432_v55  ;;  %v435_v56 = vpop.xlane.xlu1 %434 }
 0x315   :  { %1723 = vrcp.f32 %v435_v56 }
 0x316   :  { %1725 = vrcp.f32 %v438_v54 }
 0x317   :  { %v516_v57 = vpop.permute.xlu0 %515 }
 0x318   :  { %v441_v58 = vpop.xlane.xlu1 %440  ;;  %1619 = vmatprep.subr.msk.bf16.mxu1 %vm343_vm0, %v516_v57  ;;  %v526_v5 = vsel %vm343_vm0, %v516_v57, 0 }
 0x319   :  { %1727 = vrcp.f32 %v441_v58 }
 0x31c   :  { %v518_v46 = vpop.permute.xlu1 %517 }
 0x31d   :  { %v529_v13 = vsel %vm343_vm0, %v518_v46, 0 }
 0x31e   :  { %v1722_v47 = vpop.eup %1721 }
 0x31f   :  { %v1724_v59 = vpop.eup %1723  ;;  %v446_v61 = vmul.f32 %v1722_v47, %v1716_v48 }
 0x320   :  { %v447_v62 = vmul.f32 %v1724_v59, %v1718_v49  ;;  %v1726_v63 = vpop.eup %1725  ;;  %v510_v6 = vpop.permute.xlu1 %509 }
 0x321   :  { %v448_v60 = vmul.f32 %v1726_v63, %v1714_v44 }
 0x322   :  { %v450_v0 = vpack.c.bf16 %v447_v62, %v446_v61 }
 0x323   :  { %v1728_v2 = vpop.eup %1727 }
 0x324   :  { %v449_v3 = vmul.f32 %v1728_v2, %v1720_v52  ;;  %1577 = vmatprep.mubr.msk.bf16.mxu1 %vm405_vm1, %v450_v0  ;;  %v512_v15 = vpop.permute.xlu1 %511 }
 0x326   :  { %v451_v4 = vpack.c.bf16 %v449_v3, %v448_v60 }
 0x328   :  { %1578 = vmatmul.mubr.msk.bf16.vlgmr.msra.gmra.mrb[8].mxu1 %vm405_vm1, %v451_v4 }
 0x329   :  { %1582 = vmatpush3.bf16.xpose.msra.mxu1 %v526_v5  ;;  %1585 = vmatprep.mubr.msk.bf16.mxu1 %vm343_vm0, %v510_v6  ;;  %v1665_v5 = vld [vmem:[%s2320_s4] sm:$0xff]   ;;  %v1666_v6 = vld [vmem:[%s2320_s4 + $0x8] sm:$0xff]  }
 0x32a   :  { %1620 = vmatprep.subr.msk.bf16.mxu1 %vm343_vm0, %v518_v46 }
 0x331   :  { %1584 = vmatpush3.bf16.xpose.msra.mxu1 %v529_v13  ;;  %v1667_v13 = vld [vmem:[%s2320_s4 + $0x10] sm:$0xff]  }
 0x338   :  { %1586 = vmatmul.mubr.msk.bf16.vlgmr.msra.gmra.mrb[12].mxu1 %vm343_vm0, %v512_v15  ;;  %v1668_v15 = vld [vmem:[%s2320_s4 + $0x18] sm:$0xff]  }
 0x339   :  { %1044 = vmatprep.mubr.bf16.mxu1 %v1777_v1 }
 0x3fb   :  { %v2041_v16 = vpop.f32.mrb[8].mxu1 }
 0x3fc   :  { %v2043_v18 = vpop.f32.mrb[9].mxu1 }
 0x3fd   :  { %v2045_v19 = vpop.f32.mrb[10].mxu1 }
 0x3fe   :  { %v2047_v20 = vpop.f32.mrb[11].mxu1 }
 0x40b   :  { %v1587_v21 = vpop.f32.mrb[12].mxu1 }
 0x40c   :  { %v565_v22 = vpop.f32.mrb[13].mxu1  ;;  %v574_v26 = vadd.f32 %v1587_v21, %v1995_v10  ;;  %v1669_v21 = vld [vmem:[%s2320_s4 + $0x20] sm:$0xff]  }
 0x40d   :  { %v566_v23 = vadd.f32 %v565_v22, %v2000_v12  ;;  %v1588_v24 = vpop.f32.mrb[14].mxu1  ;;  %v1670_v22 = vld [vmem:[%s2320_s4 + $0x28] sm:$0xff]  }
 0x40e   :  { %v568_v25 = vpop.f32.mrb[15].mxu1  ;;  %v577_v34 = vadd.f32 %v1588_v24, %v2005_v14  ;;  %v586_v36 = vsel %vm405_vm1, %v574_v26, -inf  ;;  %v1672_v24 = vld [vmem:[%s2320_s4 + $0x38] sm:$0xff]  }
 0x40f   :  { %v569_v29 = vadd.f32 %v568_v25, %v2011_v17  ;;  %v580_v30 = vsel %vm405_vm1, %v566_v23, -inf }
 0x410   :  { %581 = vmax.xlane.f32.xlu0 %v580_v30  ;;  %v589_v37 = vsel %vm405_vm1, %v577_v34, -inf }
 0x411   :  { %v583_v31 = vsel %vm405_vm1, %v569_v29, -inf }
 0x412   :  { %584 = vmax.xlane.f32.xlu1 %v583_v31 }
 0x414   :  { %587 = vmax.xlane.f32.xlu0 %v586_v36 }
 0x418   :  { %590 = vmax.xlane.f32.xlu0 %v589_v37 }
 0x49d   :  { %v582_v12 = vpop.xlane.xlu0 %581 }
 0x49e   :  { %v592_v38 = vsub.f32 %v566_v23, %v582_v12  ;;  %v1671_v23 = vld [vmem:[%s2320_s4 + $0x30] sm:$0xff]  }
 0x49f   :  { %v585_v39 = vpop.xlane.xlu1 %584 }
 0x4a0   :  { %v596_v17 = vmul.f32 1.442695, %v592_v38  ;;  %v593_v41 = vsub.f32 %v569_v29, %v585_v39 }
 0x4a1   :  { %v588_v10 = vpop.xlane.xlu0 %587 }
 0x4a2   :  { %v594_v40 = vsub.f32 %v574_v26, %v588_v10  ;;  %v598_v45 = vmul.f32 1.442695, %v593_v41 }
 0x4a4   :  { %v600_v42 = vmul.f32 1.442695, %v594_v40 }
 0x4a5   :  { %v591_v43 = vpop.xlane.xlu0 %590 }
 0x4a6   :  { %1729 = vpow2.f32 %v600_v42  ;;  %v595_v44 = vsub.f32 %v577_v34, %v591_v43 }
 0x4a7   :  { %1731 = vpow2.f32 %v596_v17 }
 0x4a8   :  { %v602_v14 = vmul.f32 1.442695, %v595_v44 }
 0x4aa   :  { %1733 = vpow2.f32 %v602_v14 }
 0x4ab   :  { %1735 = vpow2.f32 %v598_v45 }
 0x4b0   :  { %v1730_v48 = vpop.eup %1729 }
 0x4b1   :  { %v610_v49 = vsel %vm405_vm1, %v1730_v48, 0.0  ;;  %v1732_v50 = vpop.eup %1731 }
 0x4b2   :  { %611 = vadd.xlane.f32.xlu0 %v610_v49  ;;  %v604_v52 = vsel %vm405_vm1, %v1732_v50, 0.0 }
 0x4b4   :  { %v1734_v51 = vpop.eup %1733 }
 0x4b5   :  { %v613_v53 = vsel %vm405_vm1, %v1734_v51, 0.0  ;;  %v1736_v54 = vpop.eup %1735 }
 0x4b6   :  { %605 = vadd.xlane.f32.xlu0 %v604_v52  ;;  %614 = vadd.xlane.f32.xlu1 %v613_v53  ;;  %v607_v55 = vsel %vm405_vm1, %v1736_v54, 0.0 }
 0x4ba   :  { %608 = vadd.xlane.f32.xlu1 %v607_v55  ;;  %v1673_v55 = vld [vmem:[%s2322_s8] ss:$8 sps:$4 sm:$0xff]  }
 0x4cb   :  { %630 = vrot.lane.b32.xlu1 %v1982_v7, %s1778_s1 }
 0x4cc   :  { %628 = vrot.lane.b32.xlu0 %v1984_v9, %s1778_s1 }
 0x53f   :  { %v612_v56 = vpop.xlane.xlu0 %611 }
 0x543   :  { %v615_v57 = vpop.xlane.xlu1 %614  ;;  %v606_v58 = vpop.xlane.xlu0 %605 }
 0x544   :  { %1737 = vrcp.f32 %v615_v57 }
 0x545   :  { %1739 = vrcp.f32 %v606_v58 }
 0x546   :  { %1741 = vrcp.f32 %v612_v56  ;;  %v1675_v56 = vld [vmem:[%s2322_s8 + $0x4] ss:$8 sps:$4 sm:$0xff]  }
 0x547   :  { %v609_v47 = vpop.xlane.xlu1 %608  ;;  %v629_v59 = vpop.permute.xlu0 %628  ;;  %1012 = vmatprep.subr.bf16.mxu1 %v1675_v56 }
 0x548   :  { %1743 = vrcp.f32 %v609_v47  ;;  %1589 = vmatprep.subr.bf16.mxu0 %v629_v59  ;;  %1013 = vmatpush1.bf16.msra.mxu1 %v1673_v55 }
 0x549   :  { %1590 = vmatpush3.bf16.msra.mxu0 %v629_v59 }
 0x54b   :  { %v631_v61 = vpop.permute.xlu1 %630 }
 0x54c   :  { %1591 = vmatprep.subr.bf16.mxu0 %v631_v61 }
 0x54d   :  { %1592 = vmatpush3.bf16.msra.mxu0 %v631_v61 }
 0x54e   :  { %v1738_v62 = vpop.eup %1737  ;;  %1597 = vmatprep.subr.bf16.mxu0 %v1665_v5 }
 0x54f   :  { %v1740_v63 = vpop.eup %1739  ;;  %v623_v0 = vmul.f32 %v1738_v62, %v1734_v51 }
 0x550   :  { %v1742_v7 = vpop.eup %1741  ;;  %v620_v9 = vmul.f32 %v1740_v63, %v1732_v50 }
 0x551   :  { %v622_v60 = vmul.f32 %v1742_v7, %v1730_v48 }
 0x552   :  { %v1744_v46 = vpop.eup %1743 }
 0x553   :  { %v621_v2 = vmul.f32 %v1744_v46, %v1736_v54  ;;  %v625_v4 = vpack.c.bf16 %v623_v0, %v622_v60 }
 0x555   :  { %v624_v3 = vpack.c.bf16 %v621_v2, %v620_v9 }
 0x557   :  { %1593 = vmatprep.mubr.msk.bf16.mxu0 %vm405_vm1, %v624_v3 }
 0x558   :  { %1594 = vmatmul.mubr.msk.bf16.vlgmr.msra.gmra.mrb[8].mxu0 %vm405_vm1, %v625_v4  ;;  %v1681_v4 = vld [vmem:[%s2322_s8 + $0x24] ss:$8 sps:$4 sm:$0xff]  }
 0x559   :  { %1598 = vmatpush3.bf16.msra.mxu0 %v1665_v5  ;;  %v1679_v5 = vld [vmem:[%s2322_s8 + $0x20] ss:$8 sps:$4 sm:$0xff]  }
 0x55a   :  { %1599 = vmatprep.subr.bf16.mxu0 %v1666_v6 }
 0x55d   :  { %1600 = vmatpush3.bf16.msra.mxu0 %v1666_v6  ;;  %v1684_v6 = vld [vmem:[%s2322_s8 + $0x34] ss:$8 sps:$4 sm:$0xff]  }
 0x55e   :  { %1601 = vmatprep.subr.bf16.mxu0 %v1667_v13 }
 0x561   :  { %1602 = vmatpush3.bf16.msra.mxu0 %v1667_v13  ;;  %v1682_v13 = vld [vmem:[%s2322_s8 + $0x30] ss:$8 sps:$4 sm:$0xff]  }
 0x562   :  { %1603 = vmatprep.subr.bf16.mxu0 %v1668_v15 }
 0x565   :  { %1604 = vmatpush3.bf16.msra.mxu0 %v1668_v15  ;;  %v1687_v15 = vld [vmem:[%s2322_s8 + $0x44] ss:$8 sps:$4 sm:$0xff]  }
 0x566   :  { %1605 = vmatprep.subr.bf16.mxu0 %v1669_v21 }
 0x569   :  { %1606 = vmatpush3.bf16.msra.mxu0 %v1669_v21  ;;  %v1685_v21 = vld [vmem:[%s2322_s8 + $0x40] ss:$8 sps:$4 sm:$0xff]  }
 0x56a   :  { %1607 = vmatprep.subr.bf16.mxu0 %v1670_v22 }
 0x56d   :  { %1608 = vmatpush3.bf16.msra.mxu0 %v1670_v22  ;;  %v1690_v22 = vld [vmem:[%s2322_s8 + $0x54] ss:$8 sps:$4 sm:$0xff]  }
 0x56e   :  { %1609 = vmatprep.subr.bf16.mxu0 %v1671_v23 }
 0x571   :  { %1610 = vmatpush3.bf16.msra.mxu0 %v1671_v23  ;;  %v1688_v23 = vld [vmem:[%s2322_s8 + $0x50] ss:$8 sps:$4 sm:$0xff]  }
 0x572   :  { %1611 = vmatprep.subr.bf16.mxu0 %v1672_v24 }
 0x575   :  { %1612 = vmatpush3.bf16.msra.mxu0 %v1672_v24  ;;  %v1693_v24 = vld [vmem:[%s2322_s8 + $0x64] ss:$8 sps:$4 sm:$0xff]  }
 0x62b   :  { %v1595_v25 = vpop.f32.mrb[8].mxu0 }
 0x62c   :  { %v674_v26 = vpop.f32.mrb[9].mxu0 }
 0x62d   :  { %v1596_v29 = vpop.f32.mrb[10].mxu0 }
 0x62e   :  { %v1628_v30 = vpack.i.bf16 %v1596_v29, %v1595_v25  ;;  %v677_v31 = vpop.f32.mrb[11].mxu0  ;;  %v1691_v25 = vld [vmem:[%s2322_s8 + $0x60] ss:$8 sps:$4 sm:$0xff]   ;;  %v1694_v29 = vld [vmem:[%s2322_s8 + $0x70] ss:$8 sps:$4 sm:$0xff]  }
 0x62f   :  { %v1623_v34 = vpack.i.bf16 %v677_v31, %v674_v26  ;;  %v1696_v26 = vld [vmem:[%s2322_s8 + $0x74] ss:$8 sps:$4 sm:$0xff]  }
 0x631   :  { %1624 = vrot.lane.b32.xlu1 %v1623_v34, %s1778_s1 }
 0x635   :  { %1629 = vrot.lane.b32.xlu1 %v1628_v30, %s1778_s1 }
 0x6a3   :  { %v1625_v36 = vpop.permute.xlu1 %1624 }
 0x6a4   :  { %v1627_v37 = vunpack.i.h.bf16 %v1625_v36  ;;  %v1626_v12 = vunpack.i.l.bf16 %v1625_v36 }
 0x6a6   :  { %v705_v38 = vsel %vm343_vm0, %v2043_v18, %v1626_v12  ;;  %v706_v39 = vsel %vm343_vm0, %v2047_v20, %v1627_v37  ;;  %v1435_v18 = vld [vmem:[%s2321_s5] ss:$0 sm:$0xff] }
 0x6a7   :  { %v1630_v10 = vpop.permute.xlu1 %1629  ;;  %v709_v40 = vpack.c.bf16 %v706_v39, %v705_v38 }
 0x6a8   :  { %v1632_v17 = vunpack.i.h.bf16 %v1630_v10  ;;  %v1631_v41 = vunpack.i.l.bf16 %v1630_v10 }
 0x6a9   :  { %1613 = vmatprep.mubr.bf16.mxu0 %v709_v40 }
 0x6aa   :  { %v708_v42 = vsel %vm343_vm0, %v2045_v19, %v1632_v17  ;;  %v707_v43 = vsel %vm343_vm0, %v2041_v16, %v1631_v41 }
 0x6ab   :  { %v710_v44 = vpack.c.bf16 %v708_v42, %v707_v43  ;;  %v1444_v43 = vld [vmem:[%s2323_s6] ss:$0 sm:$0xff] }
 0x6ad   :  { %1614 = vmatmul.mubr.bf16.vlgmr.msra.gmra.mrb[12].mxu0 %v710_v44 }
 0x780   :  { %v1615_v45 = vpop.f32.mrb[12].mxu0 }
 0x781   :  { %v816_v14 = vpop.f32.mrb[13].mxu0  ;;  %v825_v50 = vadd.f32 %v1615_v45, %v1435_v18 }
 0x782   :  { %v817_v20 = vadd.f32 %v1435_v18, %v816_v14  ;;  %v1616_v48 = vpop.f32.mrb[14].mxu0 }
 0x783   :  { %v819_v49 = vpop.f32.mrb[15].mxu0  ;;  %v828_v53 = vadd.f32 %v1616_v48, %v1435_v18  ;;  %v833_v16 = vadd.f32 %v825_v50, %v1940_v27  ;;  %v1445_v48 = vld [vmem:[%s2324_s7] ss:$0 sm:$0xff] }
 0x784   :  { %v820_v51 = vadd.f32 %v1435_v18, %v819_v49  ;;  %v831_v52 = vadd.f32 %v817_v20, %v1879_v8  ;;  %v1676_v8 = vld [vmem:[%s2322_s8 + $0x10] ss:$8 sps:$4 sm:$0xff]  }
 0x785   :  { %v834_v54 = vadd.f32 %v828_v53, %v1945_v28 }
 0x786   :  { %837 = vadd.xlane.f32.xlu0 %v831_v52  ;;  %v832_v19 = vadd.f32 %v820_v51, %v1890_v11  ;;  %v1678_v11 = vld [vmem:[%s2322_s8 + $0x14] ss:$8 sps:$4 sm:$0xff]  }
 0x787   :  { %1014 = vmatprep.subr.bf16.mxu1 %v1678_v11 }
 0x788   :  { %839 = vadd.xlane.f32.xlu1 %v832_v19  ;;  %1015 = vmatpush1.bf16.msra.mxu1 %v1676_v8 }
 0x789   :  { %1016 = vmatprep.subr.bf16.mxu1 %v1681_v4 }
 0x78a   :  { %841 = vadd.xlane.f32.xlu0 %v833_v16 }
 0x78c   :  { %1017 = vmatpush1.bf16.msra.mxu1 %v1679_v5 }
 0x78d   :  { %1018 = vmatprep.subr.bf16.mxu1 %v1684_v6 }
 0x78e   :  { %843 = vadd.xlane.f32.xlu0 %v834_v54 }
 0x790   :  { %1019 = vmatpush1.bf16.msra.mxu1 %v1682_v13 }
 0x791   :  { %1020 = vmatprep.subr.bf16.mxu1 %v1687_v15 }
 0x794   :  { %1021 = vmatpush1.bf16.msra.mxu1 %v1685_v21 }
 0x795   :  { %1022 = vmatprep.subr.bf16.mxu1 %v1690_v22 }
 0x798   :  { %1023 = vmatpush1.bf16.msra.mxu1 %v1688_v23 }
 0x799   :  { %1024 = vmatprep.subr.bf16.mxu1 %v1693_v24 }
 0x79c   :  { %1025 = vmatpush1.bf16.msra.mxu1 %v1691_v25 }
 0x79d   :  { %1026 = vmatprep.subr.bf16.mxu1 %v1696_v26 }
 0x7a0   :  { %1027 = vmatpush1.bf16.msra.mxu1 %v1694_v29 }
 0x813   :  { %v838_v27 = vpop.xlane.xlu0 %837 }
 0x814   :  { %v846_v28 = vmul.f32 0.0078125, %v838_v27  ;;  %v1697_v27 = vld [vmem:[%s2325_s10 + $0x40] sm:$0xff]  }
 0x815   :  { %v840_v57 = vpop.xlane.xlu1 %839  ;;  %1517 = vmatprep.subr.bf16.mxu0 %v1697_v27 }
 0x816   :  { %v850_v58 = vsub.f32 %v831_v52, %v846_v28  ;;  %v847_v47 = vmul.f32 0.0078125, %v840_v57  ;;  %v1698_v28 = vld [vmem:[%s2325_s10] sm:$0xff]   ;;  %v1700_v57 = vld [vmem:[%s2325_s10 + $0x8] sm:$0xff]  }
 0x817   :  { %v842_v59 = vpop.xlane.xlu0 %841  ;;  %1518 = vmatpush3.bf16.msra.mxu0 %v1698_v28 }
 0x818   :  { %v851_v61 = vsub.f32 %v832_v19, %v847_v47  ;;  %v848_v62 = vmul.f32 0.0078125, %v842_v59  ;;  %v854_v63 = vmul.f32 %v850_v58, %v850_v58  ;;  %v1702_v47 = vld [vmem:[%s2325_s10 + $0x10] sm:$0xff]   ;;  %v1703_v59 = vld [vmem:[%s2325_s10 + $0x58] sm:$0xff]  }
 0x81a   :  { %v2120_v7 = vsub.f32 %v833_v16, %v848_v62  ;;  %858 = vadd.xlane.f32.xlu0 %v854_v63  ;;  %v855_v46 = vmul.f32 %v851_v61, %v851_v61  ;;  %v1705_v62 = vld [vmem:[%s2325_s10 + $0x60] sm:$0xff]  }
 0x81b   :  { %v844_v0 = vpop.xlane.xlu0 %843  ;;  %v1706_v63 = vld [vmem:[%s2325_s10 + $0x20] sm:$0xff]  }
 0x81c   :  { %v849_v9 = vmul.f32 0.0078125, %v844_v0  ;;  %860 = vadd.xlane.f32.xlu1 %v855_v46  ;;  %v856_v2 = vmul.f32 %v2120_v7, %v2120_v7  ;;  %v1708_v46 = vld [vmem:[%s2325_s10 + $0x28] sm:$0xff]   ;;  %v1709_v0 = vld [vmem:[%s2325_s10 + $0x70] sm:$0xff]  }
 0x81e   :  { %v853_v60 = vsub.f32 %v834_v54, %v849_v9  ;;  %862 = vadd.xlane.f32.xlu0 %v856_v2  ;;  %v1710_v9 = vld [vmem:[%s2325_s10 + $0x30] sm:$0xff]   ;;  %v1711_v2 = vld [vmem:[%s2325_s10 + $0x78] sm:$0xff]  }
 0x820   :  { %v857_v3 = vmul.f32 %v853_v60, %v853_v60 }
 0x822   :  { %864 = vadd.xlane.f32.xlu1 %v857_v3  ;;  %v920_v3 = vld [vmem:[%s2326_s9] sm:$0x3] }
 0x823   :  { %v925_v4 = vrot.slane %v920_v3, %v94_v33  ;;  %v929_v5 = vrot.slane %v920_v3, %v98_v35 }
 0x8a7   :  { %v859_v30 = vpop.xlane.xlu0 %858 }
 0x8a8   :  { %v866_v31 = vmul.f32 0.0078125, %v859_v30 }
 0x8a9   :  { %v861_v34 = vpop.xlane.xlu1 %860 }
 0x8aa   :  { %v870_v36 = vadd.f32 1e-05, %v866_v31  ;;  %v867_v37 = vmul.f32 0.0078125, %v861_v34 }
 0x8ab   :  { %v863_v12 = vpop.xlane.xlu0 %862 }
 0x8ac   :  { %1745 = vrsqrt.f32 %v870_v36  ;;  %v871_v38 = vadd.f32 1e-05, %v867_v37  ;;  %v868_v39 = vmul.f32 0.0078125, %v863_v12 }
 0x8ae   :  { %1747 = vrsqrt.f32 %v871_v38  ;;  %v872_v10 = vadd.f32 1e-05, %v868_v39 }
 0x8af   :  { %v865_v40 = vpop.xlane.xlu1 %864 }
 0x8b0   :  { %1749 = vrsqrt.f32 %v872_v10  ;;  %v869_v17 = vmul.f32 0.0078125, %v865_v40 }
 0x8b2   :  { %v873_v41 = vadd.f32 1e-05, %v869_v17 }
 0x8b4   :  { %1751 = vrsqrt.f32 %v873_v41 }
 0x8b6   :  { %v1746_v42 = vpop.eup %1745 }
 0x8b7   :  { %v878_v44 = vmul.f32 %v1746_v42, %v850_v58  ;;  %v1701_v58 = vld [vmem:[%s2325_s10 + $0x50] sm:$0xff]  }
 0x8b8   :  { %v1748_v18 = vpop.eup %1747 }
 0x8b9   :  { %v879_v45 = vmul.f32 %v1748_v18, %v851_v61  ;;  %v888_v14 = vmul.f32 %v1444_v43, %v878_v44  ;;  %v1704_v61 = vld [vmem:[%s2325_s10 + $0x18] sm:$0xff]  }
 0x8ba   :  { %v1750_v20 = vpop.eup %1749 }
 0x8bb   :  { %v889_v49 = vmul.f32 %v1444_v43, %v879_v45  ;;  %v2166_v50 = vadd.f32 %v1445_v48, %v888_v14  ;;  %v880_v52 = vmul.f32 %v1750_v20, %v2120_v7  ;;  %v1707_v7 = vld [vmem:[%s2325_s10 + $0x68] sm:$0xff]  }
 0x8bd   :  { %v2168_v51 = vadd.f32 %v1445_v48, %v889_v49  ;;  %v890_v54 = vmul.f32 %v1444_v43, %v880_v52 }
 0x8be   :  { %v1752_v19 = vpop.eup %1751 }
 0x8bf   :  { %v902_v53 = vpack.c.bf16 %v2168_v51, %v2166_v50  ;;  %v881_v16 = vmul.f32 %v1752_v19, %v853_v60  ;;  %v2176_v8 = vadd.f32 %v1445_v48, %v890_v54  ;;  %v1712_v60 = vld [vmem:[%s2325_s10 + $0x38] sm:$0xff]  }
 0x8c1   :  { %1045 = vmatmul.mubr.bf16.vlgmr.msra.gmra.mrb[16].mxu1 %v902_v53  ;;  %v891_v55 = vmul.f32 %v1444_v43, %v881_v16 }
 0x8c2   :  { %1054 = vmatprep.mubr.bf16.mxu1 %v1777_v1  ;;  %v1699_v1 = vld [vmem:[%s2325_s10 + $0x48] sm:$0xff]  }
 0x8c3   :  { %v2174_v56 = vadd.f32 %v1445_v48, %v891_v55  ;;  %1519 = vmatprep.subr.bf16.mxu0 %v1699_v1 }
 0x8c4   :  { %1520 = vmatpush3.bf16.msra.mxu0 %v1700_v57 }
 0x8c5   :  { %v903_v11 = vpack.c.bf16 %v2174_v56, %v2176_v8  ;;  %1521 = vmatprep.subr.bf16.mxu0 %v1701_v58 }
 0x8c8   :  { %1522 = vmatpush3.bf16.msra.mxu0 %v1702_v47 }
 0x8c9   :  { %1055 = vmatmul.mubr.bf16.gmra.mrb[20].mxu1 %v903_v11  ;;  %1523 = vmatprep.subr.bf16.mxu0 %v1703_v59 }
 0x8cc   :  { %1524 = vmatpush3.bf16.msra.mxu0 %v1704_v61 }
 0x8cd   :  { %1525 = vmatprep.subr.bf16.mxu0 %v1705_v62 }
 0x8d0   :  { %1526 = vmatpush3.bf16.msra.mxu0 %v1706_v63 }
 0x8d1   :  { %1527 = vmatprep.subr.bf16.mxu0 %v1707_v7 }
 0x8d4   :  { %1528 = vmatpush3.bf16.msra.mxu0 %v1708_v46 }
 0x8d5   :  { %1529 = vmatprep.subr.bf16.mxu0 %v1709_v0 }
 0x8d8   :  { %1530 = vmatpush3.bf16.msra.mxu0 %v1710_v9 }
 0x8d9   :  { %1531 = vmatprep.subr.bf16.mxu0 %v1711_v2 }
 0x8dc   :  { %1532 = vmatpush3.bf16.msra.mxu0 %v1712_v60 }
 0x994   :  { %v1046_v6 = vpop.f32.mrb[16].mxu1 }
 0x995   :  { %v2235_v13 = vadd.f32 %v1046_v6, %v925_v4  ;;  %v1048_v15 = vpop.f32.mrb[17].mxu1 }
 0x996   :  { %v2237_v21 = vadd.f32 %v1048_v15, %v929_v5  ;;  %v1050_v22 = vpop.f32.mrb[18].mxu1 }
 0x997   :  { %v1065_v23 = vmul.f32 %v2235_v13, %v2235_v13  ;;  %v2241_v24 = vadd.f32 %v1050_v22, %v925_v4  ;;  %v1052_v25 = vpop.f32.mrb[19].mxu1 }
 0x998   :  { %v1066_v26 = vmul.f32 %v2237_v21, %v2237_v21  ;;  %v2245_v33 = vadd.f32 %v1052_v25, %v929_v5 }
 0x999   :  { %v1073_v32 = vmul.f32 %v1065_v23, %v2235_v13  ;;  %v1067_v35 = vmul.f32 %v2241_v24, %v2241_v24 }
 0x99a   :  { %v1074_v29 = vmul.f32 %v1066_v26, %v2237_v21  ;;  %v1068_v30 = vmul.f32 %v2245_v33, %v2245_v33 }
 0x99b   :  { %v1081_v31 = vmul.f32 0.044715, %v1073_v32  ;;  %v1075_v34 = vmul.f32 %v1067_v35, %v2241_v24 }
 0x99c   :  { %v1082_v36 = vmul.f32 0.044715, %v1074_v29  ;;  %v1076_v37 = vmul.f32 %v1068_v30, %v2245_v33  ;;  %v1056_v12 = vpop.f32.mrb[20].mxu1 }
 0x99d   :  { %v1089_v38 = vadd.f32 %v1081_v31, %v2235_v13  ;;  %v1083_v39 = vmul.f32 0.044715, %v1075_v34  ;;  %v2256_v10 = vadd.f32 %v1056_v12, %v925_v4  ;;  %v1058_v40 = vpop.f32.mrb[21].mxu1 }
 0x99e   :  { %v1090_v17 = vadd.f32 %v1082_v36, %v2237_v21  ;;  %v1084_v41 = vmul.f32 0.044715, %v1076_v37  ;;  %v2259_v42 = vadd.f32 %v1058_v40, %v929_v5  ;;  %v1060_v43 = vpop.f32.mrb[22].mxu1 }
 0x99f   :  { %v1097_v44 = vmul.f32 0.7978846, %v1089_v38  ;;  %v1091_v18 = vadd.f32 %v1083_v39, %v2241_v24  ;;  %v1069_v45 = vmul.f32 %v2256_v10, %v2256_v10  ;;  %v2264_v14 = vadd.f32 %v1060_v43, %v925_v4  ;;  %v1062_v20 = vpop.f32.mrb[23].mxu1 }
 0x9a0   :  { %v1098_v48 = vmul.f32 0.7978846, %v1090_v17  ;;  %v1092_v49 = vadd.f32 %v1084_v41, %v2245_v33  ;;  %v1070_v52 = vmul.f32 %v2259_v42, %v2259_v42  ;;  %v2269_v19 = vadd.f32 %v1062_v20, %v929_v5 }
 0x9a1   :  { %1753 = vtanh.f32 %v1097_v44  ;;  %v1099_v53 = vmul.f32 0.7978846, %v1091_v18  ;;  %v1077_v16 = vmul.f32 %v1069_v45, %v2256_v10  ;;  %v1071_v54 = vmul.f32 %v2264_v14, %v2264_v14 }
 0x9a2   :  { %1755 = vtanh.f32 %v1098_v48  ;;  %v1100_v55 = vmul.f32 0.7978846, %v1092_v49  ;;  %v1078_v11 = vmul.f32 %v1070_v52, %v2259_v42  ;;  %v1072_v27 = vmul.f32 %v2269_v19, %v2269_v19 }
 0x9a3   :  { %1757 = vtanh.f32 %v1099_v53  ;;  %v1085_v28 = vmul.f32 0.044715, %v1077_v16  ;;  %v1079_v1 = vmul.f32 %v1071_v54, %v2264_v14  ;;  %v1462_v16 = vld [vmem:[%s2327_s11] ss:$0 sm:$0xff] }
 0x9a4   :  { %1759 = vtanh.f32 %v1100_v55  ;;  %v1086_v57 = vmul.f32 0.044715, %v1078_v11  ;;  %v1080_v58 = vmul.f32 %v1072_v27, %v2269_v19 }
 0x9a5   :  { %v1093_v47 = vadd.f32 %v1085_v28, %v2256_v10  ;;  %v1087_v59 = vmul.f32 0.044715, %v1079_v1 }
 0x9a6   :  { %v1094_v61 = vadd.f32 %v1086_v57, %v2259_v42  ;;  %v1088_v62 = vmul.f32 0.044715, %v1080_v58 }
 0x9a7   :  { %v1101_v63 = vmul.f32 0.7978846, %v1093_v47  ;;  %v1095_v7 = vadd.f32 %v1087_v59, %v2264_v14 }
 0x9a8   :  { %v1102_v46 = vmul.f32 0.7978846, %v1094_v61  ;;  %v1096_v0 = vadd.f32 %v1088_v62, %v2269_v19 }
 0x9a9   :  { %1761 = vtanh.f32 %v1101_v63  ;;  %v1103_v9 = vmul.f32 0.7978846, %v1095_v7 }
 0x9aa   :  { %1763 = vtanh.f32 %v1102_v46  ;;  %v1104_v2 = vmul.f32 0.7978846, %v1096_v0 }
 0x9ab   :  { %v1754_v60 = vpop.eup %1753  ;;  %1765 = vtanh.f32 %v1103_v9 }
 0x9ac   :  { %v1756_v3 = vpop.eup %1755  ;;  %v1113_v4 = vadd.f32 1.0, %v1754_v60  ;;  %1767 = vtanh.f32 %v1104_v2 }
 0x9ad   :  { %v1758_v5 = vpop.eup %1757  ;;  %v1114_v6 = vadd.f32 1.0, %v1756_v3 }
 0x9ae   :  { %v1760_v15 = vpop.eup %1759  ;;  %v1121_v22 = vmul.f32 0.5, %v1113_v4  ;;  %v1115_v23 = vadd.f32 1.0, %v1758_v5 }
 0x9af   :  { %v1116_v25 = vadd.f32 1.0, %v1760_v15  ;;  %v1122_v26 = vmul.f32 0.5, %v1114_v6 }
 0x9b0   :  { %v1123_v32 = vmul.f32 0.5, %v1115_v23  ;;  %v1129_v29 = vmul.f32 %v1121_v22, %v2235_v13 }
 0x9b1   :  { %v1124_v35 = vmul.f32 0.5, %v1116_v25  ;;  %v1130_v34 = vmul.f32 %v1122_v26, %v2237_v21 }
 0x9b2   :  { %v1131_v30 = vmul.f32 %v1123_v32, %v2241_v24 }
 0x9b3   :  { %v1762_v31 = vpop.eup %1761  ;;  %v1132_v36 = vmul.f32 %v1124_v35, %v2245_v33 }
 0x9b4   :  { %v1764_v37 = vpop.eup %1763  ;;  %v1137_v12 = vpack.c.bf16 %v1131_v30, %v1129_v29  ;;  %v1117_v38 = vadd.f32 1.0, %v1762_v31 }
 0x9b5   :  { %v1766_v39 = vpop.eup %1765  ;;  %v1138_v40 = vpack.c.bf16 %v1132_v36, %v1130_v34  ;;  %v1118_v17 = vadd.f32 1.0, %v1764_v37 }
 0x9b6   :  { %v1768_v41 = vpop.eup %1767  ;;  %v1119_v43 = vadd.f32 1.0, %v1766_v39  ;;  %v1125_v44 = vmul.f32 0.5, %v1117_v38 }
 0x9b7   :  { %1308 = vmatprep.mubr.bf16.mxu0 %v1138_v40  ;;  %v1120_v18 = vadd.f32 1.0, %v1768_v41  ;;  %v1126_v45 = vmul.f32 0.5, %v1118_v17  ;;  %v1479_v17 = vld [vmem:[%s2328_s12] ss:$0 sm:$0xff] }
 0x9b8   :  { %1309 = vmatmul.mubr.bf16.vlgmr.msra.gmra.mrb[16].mxu0 %v1137_v12  ;;  %v1127_v13 = vmul.f32 0.5, %v1119_v43  ;;  %v1133_v20 = vmul.f32 %v1125_v44, %v2256_v10  ;;  %v1480_v44 = vld [vmem:[%s2329_s13] ss:$0 sm:$0xff] }
 0x9b9   :  { %v1128_v24 = vmul.f32 0.5, %v1120_v18  ;;  %v1134_v33 = vmul.f32 %v1126_v45, %v2259_v42 }
 0x9ba   :  { %v1135_v21 = vmul.f32 %v1127_v13, %v2264_v14 }
 0x9bb   :  { %v1136_v48 = vmul.f32 %v1128_v24, %v2269_v19 }
 0x9bc   :  { %v1139_v49 = vpack.c.bf16 %v1135_v21, %v1133_v20 }
 0x9bd   :  { %v1140_v52 = vpack.c.bf16 %v1136_v48, %v1134_v33 }
 0x9bf   :  { %1316 = vmatprep.mubr.bf16.mxu0 %v1140_v52 }
 0x9c0   :  { %1317 = vmatmul.mubr.bf16.gmra.mrb[20].mxu0 %v1139_v49 }
 0xa8b   :  { %v1533_v53 = vpop.f32.mrb[16].mxu0 }
 0xa8c   :  { %v1534_v54 = vpop.f32.mrb[17].mxu0 }
 0xa8d   :  { %v1535_v55 = vadd.f32 %v1534_v54, %v1533_v53  ;;  %v1536_v11 = vpop.f32.mrb[18].mxu0 }
 0xa8e   :  { %v1537_v27 = vpop.f32.mrb[19].mxu0 }
 0xa8f   :  { %v1311_v10 = vadd.f32 %v1535_v55, %v1462_v16  ;;  %v1538_v28 = vadd.f32 %v1537_v27, %v1536_v11 }
 0xa91   :  { %v1314_v14 = vadd.f32 %v1538_v28, %v1462_v16  ;;  %v1325_v42 = vadd.f32 %v1311_v10, %v2166_v50 }
 0xa93   :  { %1331 = vadd.xlane.f32.xlu0 %v1325_v42  ;;  %v1539_v19 = vpop.f32.mrb[20].mxu0  ;;  %v1326_v1 = vadd.f32 %v1314_v14, %v2168_v51 }
 0xa94   :  { %v1540_v57 = vpop.f32.mrb[21].mxu0 }
 0xa95   :  { %v1541_v58 = vadd.f32 %v1540_v57, %v1539_v19  ;;  %1333 = vadd.xlane.f32.xlu1 %v1326_v1  ;;  %v1542_v47 = vpop.f32.mrb[22].mxu0 }
 0xa96   :  { %v1543_v59 = vpop.f32.mrb[23].mxu0 }
 0xa97   :  { %v1319_v61 = vadd.f32 %v1541_v58, %v1462_v16  ;;  %v1544_v62 = vadd.f32 %v1543_v59, %v1542_v47 }
 0xa99   :  { %v1322_v63 = vadd.f32 %v1544_v62, %v1462_v16  ;;  %v1327_v7 = vadd.f32 %v1319_v61, %v2176_v8 }
 0xa9b   :  { %1335 = vadd.xlane.f32.xlu0 %v1327_v7  ;;  %v1328_v46 = vadd.f32 %v1322_v63, %v2174_v56 }
 0xa9d   :  { %1337 = vadd.xlane.f32.xlu1 %v1328_v46 }
 0xb20   :  { %v1332_v0 = vpop.xlane.xlu0 %1331 }
 0xb21   :  { %v1339_v50 = vmul.f32 0.0078125, %v1332_v0 }
 0xb22   :  { %v1334_v9 = vpop.xlane.xlu1 %1333 }
 0xb23   :  { %v1343_v2 = vsub.f32 %v1325_v42, %v1339_v50  ;;  %v1340_v60 = vmul.f32 0.0078125, %v1334_v9 }
 0xb25   :  { %v1344_v51 = vsub.f32 %v1326_v1, %v1340_v60  ;;  %v1347_v3 = vmul.f32 %v1343_v2, %v1343_v2 }
 0xb27   :  { %1351 = vadd.xlane.f32.xlu0 %v1347_v3  ;;  %v1348_v4 = vmul.f32 %v1344_v51, %v1344_v51 }
 0xb28   :  { %v1336_v5 = vpop.xlane.xlu0 %1335 }
 0xb29   :  { %v1341_v6 = vmul.f32 0.0078125, %v1336_v5  ;;  %1353 = vadd.xlane.f32.xlu1 %v1348_v4 }
 0xb2a   :  { %v1338_v15 = vpop.xlane.xlu1 %1337 }
 0xb2b   :  { %v1345_v22 = vsub.f32 %v1327_v7, %v1341_v6  ;;  %v1342_v23 = vmul.f32 0.0078125, %v1338_v15 }
 0xb2d   :  { %v1346_v8 = vsub.f32 %v1328_v46, %v1342_v23  ;;  %v1349_v25 = vmul.f32 %v1345_v22, %v1345_v22 }
 0xb2f   :  { %1355 = vadd.xlane.f32.xlu0 %v1349_v25  ;;  %v1350_v56 = vmul.f32 %v1346_v8, %v1346_v8 }
 0xb31   :  { %1357 = vadd.xlane.f32.xlu1 %v1350_v56 }
 0xbb4   :  { %v1352_v26 = vpop.xlane.xlu0 %1351 }
 0xbb5   :  { %v1359_v32 = vmul.f32 0.0078125, %v1352_v26 }
 0xbb6   :  { %v1354_v35 = vpop.xlane.xlu1 %1353 }
 0xbb7   :  { %v1363_v29 = vadd.f32 1e-05, %v1359_v32  ;;  %v1360_v30 = vmul.f32 0.0078125, %v1354_v35 }
 0xbb9   :  { %1769 = vrsqrt.f32 %v1363_v29  ;;  %v1364_v31 = vadd.f32 1e-05, %v1360_v30 }
 0xbbb   :  { %1771 = vrsqrt.f32 %v1364_v31 }
 0xbbc   :  { %v1356_v34 = vpop.xlane.xlu0 %1355 }
 0xbbd   :  { %v1361_v36 = vmul.f32 0.0078125, %v1356_v34 }
 0xbbe   :  { %v1358_v37 = vpop.xlane.xlu1 %1357 }
 0xbbf   :  { %v1365_v12 = vadd.f32 1e-05, %v1361_v36  ;;  %v1362_v38 = vmul.f32 0.0078125, %v1358_v37 }
 0xbc1   :  { %1773 = vrsqrt.f32 %v1365_v12  ;;  %v1366_v39 = vadd.f32 1e-05, %v1362_v38 }
 0xbc3   :  { %v1770_v40 = vpop.eup %1769  ;;  %1775 = vrsqrt.f32 %v1366_v39 }
 0xbc4   :  { %v1371_v41 = vmul.f32 %v1770_v40, %v1343_v2 }
 0xbc5   :  { %v1772_v43 = vpop.eup %1771 }
 0xbc6   :  { %v1381_v18 = vmul.f32 %v1479_v17, %v1371_v41  ;;  %v1372_v45 = vmul.f32 %v1772_v43, %v1344_v51 }
 0xbc8   :  { %v1391_v13 = vadd.f32 %v1480_v44, %v1381_v18  ;;  %v1382_v24 = vmul.f32 %v1479_v17, %v1372_v45 }
 0xbca   :  { %1395 = vst [vmem:[%s2330_s14] sm:$0xff] %v1391_v13  ;;  %v1392_v20 = vadd.f32 %v1480_v44, %v1382_v24 }
 0xbcb   :  { %v1774_v21 = vpop.eup %1773 }
 0xbcc   :  { %1396 = vst [vmem:[%s2330_s14 + $0x8] sm:$0xff] %v1392_v20  ;;  %v1373_v33 = vmul.f32 %v1774_v21, %v1345_v22 }
 0xbcd   :  { %v1776_v48 = vpop.eup %1775 }
 0xbce   :  { %v1383_v49 = vmul.f32 %v1479_v17, %v1373_v33  ;;  %v1374_v52 = vmul.f32 %v1776_v48, %v1346_v8 }
 0xbd0   :  { %v1393_v53 = vadd.f32 %v1480_v44, %v1383_v49  ;;  %v1384_v16 = vmul.f32 %v1479_v17, %v1374_v52 }
 0xbd2   :  { %1397 = vst [vmem:[%s2330_s14 + $0x10] sm:$0xff] %v1393_v53  ;;  %v1394_v54 = vadd.f32 %v1480_v44, %v1384_v16 }
 0xbd4   :  { %1398 = vst [vmem:[%s2330_s14 + $0x18] sm:$0xff] %v1394_v54 }

</bundles_post_ra>
